<compile_context>
chip_gen: v6e
topology: v6e:2x2x1
jax: 0.10.0
libtpu: 0.0.40
codegen_flags: <defaults>
</compile_context>

<pallas_src>
import functools
import math

import numpy as np
import jax
import jax.numpy as jnp
from jax import lax
from jax.experimental import pallas as pl
from jax.experimental.pallas import tpu as pltpu


# ----------------------------- configuration -------------------------------
IN_CHANNEL = 4        # inChanel
POSPE = 6             # positional-encoding freqs for pts (3-dim)
FEAPE = 6             # positional-encoding freqs for features
FEATURE_C = 32        # hidden width of the MLP (small test size)
OUTC = 1              # output channels

N_LIN_F = IN_CHANNEL                   # 4  raw feature channels
N_LIN_P = 3                            # 3  raw pts channels
D_FEAT_PE = IN_CHANNEL * FEAPE         # 24 angles from features
D_PTS_PE = 3 * POSPE                   # 18 angles from pts
N_ANG = D_FEAT_PE + D_PTS_PE           # 42 distinct angles
N_ANG2 = 2 * N_ANG                     # 84 = sin-phase + cos-phase angles
IN_MLPC = 2 * POSPE * 3 + 2 * FEAPE * IN_CHANNEL + 3 + IN_CHANNEL  # 91


def _build_freq_matrices():
    """Constant matrices mapping raw channels -> all 84 PE angles.

    Kernel angle-row layout (rows of the (84, tm) block):
      0 .. 23 : feat dim i, freq f  ->  feat_i * 2^f            (sin phase)
      24.. 41 : pts  dim i, freq f  ->  pts_i  * 2^f            (sin phase)
      42.. 83 : same angles, +pi/2 added via the phase column -> cos values
    """
    ff = np.zeros((N_ANG2, IN_CHANNEL), np.float32)
    fp = np.zeros((N_ANG2, 3), np.float32)
    ph = np.zeros((N_ANG2, 1), np.float32)
    for i in range(IN_CHANNEL):
        for f in range(FEAPE):
            a = i * FEAPE + f
            ff[a, i] = 2.0 ** f
            ff[N_ANG + a, i] = 2.0 ** f
    for i in range(3):
        for f in range(POSPE):
            a = D_FEAT_PE + i * POSPE + f
            fp[a, i] = 2.0 ** f
            fp[N_ANG + a, i] = 2.0 ** f
    ph[N_ANG:, 0] = np.pi / 2.0          # cos(x) = sin(x + pi/2)
    return ff, fp, ph


_FREQ_FEAT, _FREQ_PTS, _PHASE = _build_freq_matrices()


# --------------------------------- kernel -----------------------------------
def _brdf_kernel(feat_ref, pts_ref,
                 ffeat_ref, fpts_ref, phase_ref,
                 wlf_ref, wlp_ref, wpe_ref, b1_ref,
                 w2_ref, b2_ref, w3_ref, b3_ref,
                 out_ref):
    # "NT" dimension numbers: contract the (small) channel dim of both sides,
    # producing (rows, tm) with the batch tile on the 128-lane axis.
    nt = (((1,), (1,)), ((), ()))
    feat = feat_ref[...]               # (tm, IN_CHANNEL)  native HBM layout
    pts = pts_ref[...]                 # (tm, 3)

    # All 84 PE angles (sin-phase + cos-phase via +pi/2 rows): two tiny MXU
    # ops + one broadcast add, then a single EUP pass.
    ang = (lax.dot_general(ffeat_ref[...], feat, nt,
                           preferred_element_type=jnp.float32)
           + lax.dot_general(fpts_ref[...], pts, nt,
                             preferred_element_type=jnp.float32)
           + phase_ref[...])                                   # (84, tm)
    s = jnp.sin(ang)
    # TODO(synk): remaining EUP lever = base-octave sin/cos only (14/pt) with
    # VPU double-angle recurrences for the 5 higher octaves; needs an exact
    # (non-MXU) base angle to stay within 1e-4, so it is not done here.

    # Layer 1: linear(raw inputs) + PE part + bias -> (C, tm), ReLU
    h = (lax.dot_general(wlf_ref[...], feat, nt,
                         preferred_element_type=jnp.float32)
         + lax.dot_general(wlp_ref[...], pts, nt,
                           preferred_element_type=jnp.float32)
         + jnp.dot(wpe_ref[...], s, preferred_element_type=jnp.float32)
         + b1_ref[...])
    h = jnp.maximum(h, 0.0)

    # Layer 2
    h = jnp.dot(w2_ref[...], h, preferred_element_type=jnp.float32) + b2_ref[...]
    h = jnp.maximum(h, 0.0)

    # Layer 3 + sigmoid -> lane-dense (OUTC, tm) store.
    # TODO(synk): the (1, tm) sigmoid wastes 7/8 of each EUP push (~9% of EUP
    # work); could reshape to (8, tm//8) before sigmoid if profiles demand it.
    o = jnp.dot(w3_ref[...], h, preferred_element_type=jnp.float32) + b3_ref[...]
    out_ref[...] = jax.nn.sigmoid(o).astype(out_ref.dtype)


# -------------------------------- wrapper ------------------------------------
@functools.partial(jax.jit, static_argnames=("tm",))
def mlp_brdf_forward(pts, features, w1, b1, w2, b2, w3, b3, *, tm=8192):
    """pts: (N, 3), features: (N, IN_CHANNEL).  Weights stored as (in, out),
    biases as (1, out).  Returns (N, OUTC)."""
    f32 = jnp.float32
    n = pts.shape[0]

    # ---- batch tiling: big tiles (amortize ~0.35us/step) but keep >= 2 grid
    #      steps so both v7x TensorCores get work; no padding needed (Pallas
    #      masks the partial tail block).
    tm = max(128, (int(tm) // 128) * 128)
    half = ((n + 1) // 2 + 127) // 128 * 128
    tm_eff = max(128, min(tm, half))
    grid = (pl.cdiv(n, tm_eff),)

    feat = features.astype(f32)                    # (n, IN_CHANNEL), native layout
    pts_f = pts.astype(f32)                        # (n, 3),          native layout

    # ---- split W1 into [feat-linear | pts-linear | PE] parts matching the
    #      original torch.cat order: [features, pts, PE(features), PE(pts)],
    #      each PE block being [sin | cos].
    w1 = w1.astype(f32)
    rf0, rf1 = N_LIN_F, N_LIN_F + N_LIN_P                    # 4, 7
    fs0, fs1 = rf1, rf1 + D_FEAT_PE                          # 7, 31   sin(feat)
    fc0, fc1 = fs1, fs1 + D_FEAT_PE                          # 31, 55  cos(feat)
    ps0, ps1 = fc1, fc1 + D_PTS_PE                           # 55, 73  sin(pts)
    pc0, pc1 = ps1, ps1 + D_PTS_PE                           # 73, 91  cos(pts)
    wlf_t = w1[:rf0].T                                       # (C, 4)
    wlp_t = w1[rf0:rf1].T                                    # (C, 3)
    # PE columns ordered like the kernel's angle rows:
    #   [sin(feat), sin(pts), cos(feat), cos(pts)]
    wpe_t = jnp.concatenate(
        [w1[fs0:fs1], w1[ps0:ps1], w1[fc0:fc1], w1[pc0:pc1]], axis=0).T  # (C, 84)

    b1_c = b1.reshape(FEATURE_C, 1).astype(f32)
    w2_t = w2.T.astype(f32)                                  # (C, C)
    b2_c = b2.reshape(FEATURE_C, 1).astype(f32)
    w3_t = w3.T.astype(f32)                                  # (OUTC, C)
    b3_c = b3.reshape(OUTC, 1).astype(f32)

    ffeat = jnp.asarray(_FREQ_FEAT)                          # (84, 4)
    fpts = jnp.asarray(_FREQ_PTS)                            # (84, 3)
    phase = jnp.asarray(_PHASE)                              # (84, 1)

    # ---- VMEM budget scales with the tile (the narrow (tm,3)/(tm,4) input
    #      windows are lane-padded to 128 in VMEM): ~3.5 KB/point + slack.
    vmem_limit = int(min(96 * 2**20, 16 * 2**20 + 4 * 1024 * tm_eff))

    # ---- advisory cost estimate ----
    flops = 2 * n * (N_ANG2 * (N_LIN_F + N_LIN_P)
                     + FEATURE_C * (N_LIN_F + N_LIN_P)
                     + FEATURE_C * N_ANG2
                     + FEATURE_C * FEATURE_C
                     + OUTC * FEATURE_C)
    transc = n * (N_ANG2 + OUTC)
    bytes_acc = 4 * n * (N_LIN_F + N_LIN_P + OUTC) + 4 * (
        N_ANG2 * (N_LIN_F + N_LIN_P + 1)
        + FEATURE_C * (N_LIN_F + N_LIN_P + N_ANG2 + FEATURE_C + 2)
        + OUTC * (FEATURE_C + 1))

    batch_in = lambda i: (i, 0)        # batch-tiled inputs (batch on HBM rows)
    batch_out = lambda i: (0, i)       # kernel output keeps batch on lanes
    const = lambda i: (0, 0)           # weights: same block every step

    out_t = pl.pallas_call(
        _brdf_kernel,
        out_shape=jax.ShapeDtypeStruct((OUTC, n), f32),
        grid=grid,
        in_specs=[
            pl.BlockSpec((tm_eff, IN_CHANNEL), batch_in),    # features (native)
            pl.BlockSpec((tm_eff, 3), batch_in),             # pts      (native)
            pl.BlockSpec((N_ANG2, IN_CHANNEL), const),       # freq matrix (feat)
            pl.BlockSpec((N_ANG2, 3), const),                # freq matrix (pts)
            pl.BlockSpec((N_ANG2, 1), const),                # +pi/2 phase rows
            pl.BlockSpec((FEATURE_C, IN_CHANNEL), const),    # W1 feat-linear part
            pl.BlockSpec((FEATURE_C, 3), const),             # W1 pts-linear part
            pl.BlockSpec((FEATURE_C, N_ANG2), const),        # W1 PE part
            pl.BlockSpec((FEATURE_C, 1), const),             # b1
            pl.BlockSpec((FEATURE_C, FEATURE_C), const),     # W2^T
            pl.BlockSpec((FEATURE_C, 1), const),             # b2
            pl.BlockSpec((OUTC, FEATURE_C), const),          # W3^T
            pl.BlockSpec((OUTC, 1), const),                  # b3
        ],
        out_specs=pl.BlockSpec((OUTC, tm_eff), batch_out),
        compiler_params=pltpu.CompilerParams(
            dimension_semantics=("parallel",),
            vmem_limit_bytes=vmem_limit),
        cost_estimate=pl.CostEstimate(
            flops=flops, transcendentals=transc, bytes_accessed=bytes_acc),
    )(feat, pts_f, ffeat, fpts, phase, wlf_t, wlp_t, wpe_t, b1_c,
      w2_t, b2_c, w3_t, b3_c)

    return out_t.T                                           # (n, OUTC)


# --------------------------- plain-JAX reference ----------------------------
def _pe_ref(x, freqs):
    fb = 2.0 ** jnp.arange(freqs, dtype=jnp.float32)
    p = (x[..., None] * fb).reshape(x.shape[:-1] + (freqs * x.shape[-1],))
    return jnp.concatenate([jnp.sin(p), jnp.cos(p)], axis=-1)


def _ref_forward(pts, features, w1, b1, w2, b2, w3, b3):
    mlp_in = jnp.concatenate(
        [features, pts, _pe_ref(features, FEAPE), _pe_ref(pts, POSPE)], axis=-1)
    h = jnp.maximum(mlp_in @ w1 + b1, 0.0)
    h = jnp.maximum(h @ w2 + b2, 0.0)
    return jax.nn.sigmoid(h @ w3 + b3)


if __name__ == "__main__":
    key = jax.random.PRNGKey(0)
    k_pts, k_feat, k_w1, k_b1, k_w2, k_b2, k_w3 = jax.random.split(key, 7)

    N = 200   # deliberately NOT a multiple of 128: exercises the masked tail block
    pts = jax.random.normal(k_pts, (N, 3), dtype=jnp.float32)
    features = jax.random.normal(k_feat, (N, IN_CHANNEL), dtype=jnp.float32)

    # Deterministic parameter init (Linear weights stored as (in, out)).
    def _init(k, shape, fan_in):
        bound = 1.0 / math.sqrt(fan_in)
        return jax.random.uniform(k, shape, jnp.float32, -bound, bound)

    w1 = _init(k_w1, (IN_MLPC, FEATURE_C), IN_MLPC)
    b1 = _init(k_b1, (1, FEATURE_C), IN_MLPC)
    w2 = _init(k_w2, (FEATURE_C, FEATURE_C), FEATURE_C)
    b2 = _init(k_b2, (1, FEATURE_C), FEATURE_C)
    w3 = _init(k_w3, (FEATURE_C, OUTC), FEATURE_C)
    b3 = jnp.zeros((1, OUTC), jnp.float32)   # torch.nn.init.constant_(bias, 0)

    out = mlp_brdf_forward(pts, features, w1, b1, w2, b2, w3, b3)
    out = jax.block_until_ready(out)

    ref = _ref_forward(pts, features, w1, b1[0], w2, b2[0], w3, b3[0])
    assert out.shape == (N, OUTC)
    max_diff = float(jnp.max(jnp.abs(out - ref)))
    # f32 everywhere; tolerance covers MXU multi-pass f32 rounding of the PE
    # angles (the 3-layer MLP + sigmoid strongly contracts that error).
    assert jnp.allclose(out, ref, atol=1e-4, rtol=1e-4), (
        "mismatch vs reference, max|diff|=%e" % max_diff)

    print("KERNEL_OK")
</pallas_src>

<mosaic_0001>
module attributes {stable_mosaic.version = 11 : i64} {
  func.func @_brdf_kernel(%arg0: i32, %arg1: memref<128x4xf32, #tpu.memory_space<vmem>>, %arg2: memref<128x3xf32, #tpu.memory_space<vmem>>, %arg3: memref<84x4xf32, #tpu.memory_space<vmem>>, %arg4: memref<84x3xf32, #tpu.memory_space<vmem>>, %arg5: memref<84x1xf32, #tpu.memory_space<vmem>>, %arg6: memref<32x4xf32, #tpu.memory_space<vmem>>, %arg7: memref<32x3xf32, #tpu.memory_space<vmem>>, %arg8: memref<32x84xf32, #tpu.memory_space<vmem>>, %arg9: memref<32x1xf32, #tpu.memory_space<vmem>>, %arg10: memref<32x32xf32, #tpu.memory_space<vmem>>, %arg11: memref<32x1xf32, #tpu.memory_space<vmem>>, %arg12: memref<1x32xf32, #tpu.memory_space<vmem>>, %arg13: memref<1x1xf32, #tpu.memory_space<vmem>>, %arg14: memref<1x128xf32, #tpu.memory_space<vmem>>) attributes {dimension_semantics = [#tpu.dimension_semantics<parallel>], iteration_bounds = array<i64: 2>, scalar_prefetch = 0 : i64, scratch_operands = 0 : i64, tpu.core_type = #tpu.core_type<tc>, window_params = [{transform_indices = @transform_0, window_bounds = array<i64: 128, 4>}, {transform_indices = @transform_1, window_bounds = array<i64: 128, 3>}, {pipeline_mode = #tpu.pipeline_mode<synchronous>, transform_indices = @transform_2, window_bounds = array<i64: 84, 4>}, {pipeline_mode = #tpu.pipeline_mode<synchronous>, transform_indices = @transform_3, window_bounds = array<i64: 84, 3>}, {pipeline_mode = #tpu.pipeline_mode<synchronous>, transform_indices = @transform_4, window_bounds = array<i64: 84, 1>}, {pipeline_mode = #tpu.pipeline_mode<synchronous>, transform_indices = @transform_5, window_bounds = array<i64: 32, 4>}, {pipeline_mode = #tpu.pipeline_mode<synchronous>, transform_indices = @transform_6, window_bounds = array<i64: 32, 3>}, {pipeline_mode = #tpu.pipeline_mode<synchronous>, transform_indices = @transform_7, window_bounds = array<i64: 32, 84>}, {pipeline_mode = #tpu.pipeline_mode<synchronous>, transform_indices = @transform_8, window_bounds = array<i64: 32, 1>}, {pipeline_mode = #tpu.pipeline_mode<synchronous>, transform_indices = @transform_9, window_bounds = array<i64: 32, 32>}, {pipeline_mode = #tpu.pipeline_mode<synchronous>, transform_indices = @transform_10, window_bounds = array<i64: 32, 1>}, {pipeline_mode = #tpu.pipeline_mode<synchronous>, transform_indices = @transform_11, window_bounds = array<i64: 1, 32>}, {pipeline_mode = #tpu.pipeline_mode<synchronous>, transform_indices = @transform_12, window_bounds = array<i64: 1, 1>}, {transform_indices = @transform_13, window_bounds = array<i64: 1, 128>}]} {
    %c0 = arith.constant 0 : index
    %c0_0 = arith.constant 0 : index
    %0 = vector.load %arg1[%c0, %c0_0] : memref<128x4xf32, #tpu.memory_space<vmem>>, vector<128x4xf32>
    %c0_1 = arith.constant 0 : index
    %c0_2 = arith.constant 0 : index
    %1 = vector.load %arg2[%c0_1, %c0_2] : memref<128x3xf32, #tpu.memory_space<vmem>>, vector<128x3xf32>
    %c0_3 = arith.constant 0 : index
    %c0_4 = arith.constant 0 : index
    %2 = vector.load %arg3[%c0_3, %c0_4] : memref<84x4xf32, #tpu.memory_space<vmem>>, vector<84x4xf32>
    %cst = arith.constant dense<0.000000e+00> : vector<84x128xf32>
    %3 = tpu.matmul %2, %0, %cst {dimension_numbers = #tpu.dot_dimension_numbers<[1], [1], [0], [0], [0, 0, 1, 0], [], []>} : vector<84x4xf32>, vector<128x4xf32>, vector<84x128xf32> -> vector<84x128xf32>
    %c0_5 = arith.constant 0 : index
    %c0_6 = arith.constant 0 : index
    %4 = vector.load %arg4[%c0_5, %c0_6] : memref<84x3xf32, #tpu.memory_space<vmem>>, vector<84x3xf32>
    %cst_7 = arith.constant dense<0.000000e+00> : vector<84x128xf32>
    %5 = tpu.matmul %4, %1, %cst_7 {dimension_numbers = #tpu.dot_dimension_numbers<[1], [1], [0], [0], [0, 0, 1, 0], [], []>} : vector<84x3xf32>, vector<128x3xf32>, vector<84x128xf32> -> vector<84x128xf32>
    %6 = arith.addf %3, %5 : vector<84x128xf32>
    %c0_8 = arith.constant 0 : index
    %c0_9 = arith.constant 0 : index
    %7 = vector.load %arg5[%c0_8, %c0_9] : memref<84x1xf32, #tpu.memory_space<vmem>>, vector<84x1xf32>
    %8 = vector.broadcast %7 : vector<84x1xf32> to vector<84x128xf32>
    %9 = arith.addf %6, %8 : vector<84x128xf32>
    %10 = math.sin %9 : vector<84x128xf32>
    %c0_10 = arith.constant 0 : index
    %c0_11 = arith.constant 0 : index
    %11 = vector.load %arg6[%c0_10, %c0_11] : memref<32x4xf32, #tpu.memory_space<vmem>>, vector<32x4xf32>
    %cst_12 = arith.constant dense<0.000000e+00> : vector<32x128xf32>
    %12 = tpu.matmul %11, %0, %cst_12 {dimension_numbers = #tpu.dot_dimension_numbers<[1], [1], [0], [0], [0, 0, 1, 0], [], []>} : vector<32x4xf32>, vector<128x4xf32>, vector<32x128xf32> -> vector<32x128xf32>
    %c0_13 = arith.constant 0 : index
    %c0_14 = arith.constant 0 : index
    %13 = vector.load %arg7[%c0_13, %c0_14] : memref<32x3xf32, #tpu.memory_space<vmem>>, vector<32x3xf32>
    %cst_15 = arith.constant dense<0.000000e+00> : vector<32x128xf32>
    %14 = tpu.matmul %13, %1, %cst_15 {dimension_numbers = #tpu.dot_dimension_numbers<[1], [1], [0], [0], [0, 0, 1, 0], [], []>} : vector<32x3xf32>, vector<128x3xf32>, vector<32x128xf32> -> vector<32x128xf32>
    %15 = arith.addf %12, %14 : vector<32x128xf32>
    %c0_16 = arith.constant 0 : index
    %c0_17 = arith.constant 0 : index
    %16 = vector.load %arg8[%c0_16, %c0_17] : memref<32x84xf32, #tpu.memory_space<vmem>>, vector<32x84xf32>
    %cst_18 = arith.constant dense<0.000000e+00> : vector<32x128xf32>
    %17 = tpu.matmul %16, %10, %cst_18 {dimension_numbers = #tpu.dot_dimension_numbers<[1], [0], [0], [1], [0, 0, 1, 1], [], []>} : vector<32x84xf32>, vector<84x128xf32>, vector<32x128xf32> -> vector<32x128xf32>
    %18 = arith.addf %15, %17 : vector<32x128xf32>
    %c0_19 = arith.constant 0 : index
    %c0_20 = arith.constant 0 : index
    %19 = vector.load %arg9[%c0_19, %c0_20] : memref<32x1xf32, #tpu.memory_space<vmem>>, vector<32x1xf32>
    %20 = vector.broadcast %19 : vector<32x1xf32> to vector<32x128xf32>
    %21 = arith.addf %18, %20 : vector<32x128xf32>
    %cst_21 = arith.constant 0.000000e+00 : f32
    %22 = vector.broadcast %cst_21 : f32 to vector<32x128xf32>
    %23 = arith.maximumf %21, %22 : vector<32x128xf32>
    %c0_22 = arith.constant 0 : index
    %c0_23 = arith.constant 0 : index
    %24 = vector.load %arg10[%c0_22, %c0_23] : memref<32x32xf32, #tpu.memory_space<vmem>>, vector<32x32xf32>
    %cst_24 = arith.constant dense<0.000000e+00> : vector<32x128xf32>
    %25 = tpu.matmul %24, %23, %cst_24 {dimension_numbers = #tpu.dot_dimension_numbers<[1], [0], [0], [1], [0, 0, 1, 1], [], []>} : vector<32x32xf32>, vector<32x128xf32>, vector<32x128xf32> -> vector<32x128xf32>
    %c0_25 = arith.constant 0 : index
    %c0_26 = arith.constant 0 : index
    %26 = vector.load %arg11[%c0_25, %c0_26] : memref<32x1xf32, #tpu.memory_space<vmem>>, vector<32x1xf32>
    %27 = vector.broadcast %26 : vector<32x1xf32> to vector<32x128xf32>
    %28 = arith.addf %25, %27 : vector<32x128xf32>
    %cst_27 = arith.constant 0.000000e+00 : f32
    %29 = vector.broadcast %cst_27 : f32 to vector<32x128xf32>
    %30 = arith.maximumf %28, %29 : vector<32x128xf32>
    %c0_28 = arith.constant 0 : index
    %c0_29 = arith.constant 0 : index
    %31 = vector.load %arg12[%c0_28, %c0_29] : memref<1x32xf32, #tpu.memory_space<vmem>>, vector<1x32xf32>
    %cst_30 = arith.constant dense<0.000000e+00> : vector<1x128xf32>
    %32 = tpu.matmul %31, %30, %cst_30 {dimension_numbers = #tpu.dot_dimension_numbers<[1], [0], [0], [1], [0, 0, 1, 1], [], []>} : vector<1x32xf32>, vector<32x128xf32>, vector<1x128xf32> -> vector<1x128xf32>
    %c0_31 = arith.constant 0 : index
    %c0_32 = arith.constant 0 : index
    %33 = vector.load %arg13[%c0_31, %c0_32] : memref<1x1xf32, #tpu.memory_space<vmem>>, vector<1x1xf32>
    %34 = vector.broadcast %33 : vector<1x1xf32> to vector<1x128xf32>
    %35 = arith.addf %32, %34 : vector<1x128xf32>
    %36 = arith.negf %35 : vector<1x128xf32>
    %37 = math.exp %36 : vector<1x128xf32>
    %cst_33 = arith.constant 1.000000e+00 : f32
    %38 = vector.broadcast %cst_33 : f32 to vector<1x128xf32>
    %39 = arith.addf %38, %37 : vector<1x128xf32>
    %40 = arith.divf %38, %39 : vector<1x128xf32>
    %c0_34 = arith.constant 0 : index
    %c0_35 = arith.constant 0 : index
    %41 = vector.load %arg14[%c0_34, %c0_35] : memref<1x128xf32, #tpu.memory_space<vmem>>, vector<1x128xf32>
    tpu.vector_store %arg14[%c0_34, %c0_35], %40 {strides = array<i32>} : memref<1x128xf32, #tpu.memory_space<vmem>>, vector<1x128xf32>,
    return
  }
  func.func @transform_0(%arg0: i32) -> (i32, i32) {
    %c0_i32 = arith.constant 0 : i32
    %c0_i32_0 = arith.constant 0 : i32
    return %arg0, %c0_i32 : i32, i32
  }
  func.func @transform_1(%arg0: i32) -> (i32, i32) {
    %c0_i32 = arith.constant 0 : i32
    %c0_i32_0 = arith.constant 0 : i32
    return %arg0, %c0_i32 : i32, i32
  }
  func.func @transform_2(%arg0: i32) -> (i32, i32) {
    %c0_i32 = arith.constant 0 : i32
    %c0_i32_0 = arith.constant 0 : i32
    %c0_i32_1 = arith.constant 0 : i32
    return %c0_i32, %c0_i32_0 : i32, i32
  }
  func.func @transform_3(%arg0: i32) -> (i32, i32) {
    %c0_i32 = arith.constant 0 : i32
    %c0_i32_0 = arith.constant 0 : i32
    %c0_i32_1 = arith.constant 0 : i32
    return %c0_i32, %c0_i32_0 : i32, i32
  }
  func.func @transform_4(%arg0: i32) -> (i32, i32) {
    %c0_i32 = arith.constant 0 : i32
    %c0_i32_0 = arith.constant 0 : i32
    %c0_i32_1 = arith.constant 0 : i32
    return %c0_i32, %c0_i32_0 : i32, i32
  }
  func.func @transform_5(%arg0: i32) -> (i32, i32) {
    %c0_i32 = arith.constant 0 : i32
    %c0_i32_0 = arith.constant 0 : i32
    %c0_i32_1 = arith.constant 0 : i32
    return %c0_i32, %c0_i32_0 : i32, i32
  }
  func.func @transform_6(%arg0: i32) -> (i32, i32) {
    %c0_i32 = arith.constant 0 : i32
    %c0_i32_0 = arith.constant 0 : i32
    %c0_i32_1 = arith.constant 0 : i32
    return %c0_i32, %c0_i32_0 : i32, i32
  }
  func.func @transform_7(%arg0: i32) -> (i32, i32) {
    %c0_i32 = arith.constant 0 : i32
    %c0_i32_0 = arith.constant 0 : i32
    %c0_i32_1 = arith.constant 0 : i32
    return %c0_i32, %c0_i32_0 : i32, i32
  }
  func.func @transform_8(%arg0: i32) -> (i32, i32) {
    %c0_i32 = arith.constant 0 : i32
    %c0_i32_0 = arith.constant 0 : i32
    %c0_i32_1 = arith.constant 0 : i32
    return %c0_i32, %c0_i32_0 : i32, i32
  }
  func.func @transform_9(%arg0: i32) -> (i32, i32) {
    %c0_i32 = arith.constant 0 : i32
    %c0_i32_0 = arith.constant 0 : i32
    %c0_i32_1 = arith.constant 0 : i32
    return %c0_i32, %c0_i32_0 : i32, i32
  }
  func.func @transform_10(%arg0: i32) -> (i32, i32) {
    %c0_i32 = arith.constant 0 : i32
    %c0_i32_0 = arith.constant 0 : i32
    %c0_i32_1 = arith.constant 0 : i32
    return %c0_i32, %c0_i32_0 : i32, i32
  }
  func.func @transform_11(%arg0: i32) -> (i32, i32) {
    %c0_i32 = arith.constant 0 : i32
    %c0_i32_0 = arith.constant 0 : i32
    %c0_i32_1 = arith.constant 0 : i32
    return %c0_i32, %c0_i32_0 : i32, i32
  }
  func.func @transform_12(%arg0: i32) -> (i32, i32) {
    %c0_i32 = arith.constant 0 : i32
    %c0_i32_0 = arith.constant 0 : i32
    %c0_i32_1 = arith.constant 0 : i32
    return %c0_i32, %c0_i32_0 : i32, i32
  }
  func.func @transform_13(%arg0: i32) -> (i32, i32) {
    %c0_i32 = arith.constant 0 : i32
    %c0_i32_0 = arith.constant 0 : i32
    return %c0_i32, %arg0 : i32, i32
  }
}

</mosaic_0001>

<bundles_post_ra>
// kernel: mlp_brdf_forward.1
= control target key start
LH: loop header
LB: loop body
LE: loop exit
PB: predicated region body
PF: predicated region fallthrough
CT: control target
= control target key end

     0   :  { %s5616_s0 = inlined_call_operand.vmem [shape: f32[200,4], index: 0, kind: input, shape index: {}]   ;;  %s5617_s1 = inlined_call_operand.vmem [shape: f32[200,3], index: 1, kind: input, shape index: {}]   ;;  %s5618_s2 = inlined_call_operand.vmem [shape: f32[84,4], index: 2, kind: input, shape index: {}]   ;;  %s5619_s3 = inlined_call_operand.vmem [shape: f32[84,3], index: 3, kind: input, shape index: {}]   ;;  %s5620_s4 = inlined_call_operand.vmem [shape: f32[84,1], index: 4, kind: input, shape index: {}]   ;;  %s5621_s5 = inlined_call_operand.vmem [shape: f32[32,4], index: 5, kind: input, shape index: {}]   ;;  %s5622_s6 = inlined_call_operand.vmem [shape: f32[32,3], index: 6, kind: input, shape index: {}]   ;;  %s5623_s7 = inlined_call_operand.vmem [shape: f32[32,84], index: 7, kind: input, shape index: {}]   ;;  %s5624_s8 = inlined_call_operand.vmem [shape: f32[32,1], index: 8, kind: input, shape index: {}]   ;;  %s5625_s9 = inlined_call_operand.vmem [shape: f32[32,32], index: 9, kind: input, shape index: {}]   ;;  %s5626_s10 = inlined_call_operand.vmem [shape: f32[32,1], index: 10, kind: input, shape index: {}]   ;;  %s5627_s11 = inlined_call_operand.vmem [shape: f32[1,32], index: 11, kind: input, shape index: {}]   ;;  %s5628_s12 = inlined_call_operand.<no memory space> [shape: f32[1,1], index: 12, kind: input, shape index: {}]   ;;  %s5629_s13 = inlined_call_operand.hbm [shape: f32[1,200], index: 13, kind: output, shape index: {}]  }
   0x1   :  { %5698 = sst [smem:[#allocation42_spill]] %s5616_s0  ;;  %v18_v0 = vstv %s5628_s12 }
   0x2   :  { %5699 = sst [smem:[#allocation43_spill]] %s5617_s1  ;;  %19 = vst [vmem:[#allocation2] sm:$0x1] %v18_v0 }
   0x3   :  { %20 = vsyncpa [#allocation4], 0 }
   0x4   :  { %22 = vsyncpa [#allocation4 + $0x1], 0  ;;  %s3656_s27 = smov 0   ;;  %s3658_s28 = smov 0  }
   0x5   :  { %s3660_s29 = smov 0   ;;  %s3662_s30 = smov 0  }
   0x6 LB: > { %s2827_s12 = sadd.s32 4294967295, %s3571_s30   ;;  %s2828_s14 = sadd.s32 4294967294, %s3571_s30   ;;  %s3571_s30 = sphi %s3662_s30, %s5815_s30   ;;  %s3567_s29 = sphi %s3660_s29, %s5814_s29   ;;  %s3563_s28 = sphi %s3658_s28, %s5813_s28   ;;  %s3559_s27 = sphi %s3656_s27, %s5812_s27  }
   0x7   : > { %s3679_s15 = sadd.s32 1, %s3571_s30   ;;  %s318_s16 = sadd.s32 1, %s3567_s29 }
   0x8   : > { %s315_s17 = ssub.s32 %s3571_s30, %s3679_s15  ;;  %p328_p0 = scmp.ne.s32.totalorder %s3567_s29, %s3563_s28 }
   0x9   : > { %p316_p1 = scmp.eq.s32.totalorder %s315_s17, 0  ;;  %p329_p2 = scmp.eq.s32.totalorder %s2827_s12, 1 }
   0xa   : > { %p334_p3 = scmp.ne.s32.totalorder %s3563_s28, %s3559_s27  ;;  %p335_p4 = scmp.eq.s32.totalorder %s2828_s14, 1 }
   0xb   : > { %s3689_s18 = scalar_select %p316_p1, %s3567_s29, %s318_s16  }
   0xc   : > { %p3691_p5 = por %p329_p2, %p328_p0  ;;  %p3695_p6 = por %p335_p4, %p334_p3 }
   0xd   : > { %p2831_p7 = scmp.ge.s32.totalorder %s3571_s30, 1  ;;  %p420_p8 = scmp.lt.s32.totalorder %s3571_s30, 3 }
   0xf   : > { %p421_p9 = pnand %p2831_p7, %p420_p8 }
  0x11   : > { %424 = sbr.rel (%p421_p9) target bundleno = 1259 (0x4eb), region = 72 }
  0x16   : > { %s3701_s21 = sshll.u32 %s2827_s12, 4  ;;  %v5630_v1 = vmov 0.0   ;;  %vm3574_vm0 = vmmov 0   ;;  %v3575_v2 = vmov 0   ;;  %vm558_vm1 = vcmask 23552   ;;  %s5702_s1 = sld [smem:[#allocation43_spill]] }
  0x17   : > { %3110 = vmatprep.subr.mxu0 %v5630_v1  ;;  %3175 = vmatprep.subr.mxu1 %v5630_v1  ;;  %p481_p10 = scmp.lt.s32.totalorder %s3701_s21, 24  ;;  %vm760_vm2 = vcmask 31744   ;;  %s5703_s0 = sld [smem:[#allocation42_spill]]  ;;  %v972_v11 = vld [vmem:[%s5620_s4 + $0x50] sm:$0xf]  ;;  %v970_v12 = vld [vmem:[%s5620_s4 + $0x40] sm:$0xff] }
  0x18   : > { %3142 = vmatprep.mubr.msk.f32.mxu0 %vm3574_vm0, %v5630_v1  ;;  %3207 = vmatprep.mubr.msk.f32.mxu1 %vm3574_vm0, %v5630_v1  ;;  %v971_v13 = vld [vmem:[%s5620_s4 + $0x48] sm:$0xff]  ;;  %v969_v16 = vld [vmem:[%s5620_s4 + $0x38] sm:$0xff]  ;;  %v968_v17 = vld [vmem:[%s5620_s4 + $0x30] sm:$0xff]  ;;  %s474_s17 = sand.u32 1, %s3563_s28   ;;  %s5581_s12 = scalar_lea.hbm %s5629_s13, %s3701_s21 }
  0x19   : > { %s482_s22 = scalar_select %p481_p10, %s3701_s21, 24  ;;  %3461 = vset.pattern.permute.xlu0 %v3575_v2  ;;  %3462 = vset.pattern.permute.xlu1 %v3575_v2  ;;  %v967_v20 = vld [vmem:[%s5620_s4 + $0x28] sm:$0xff]  ;;  %v966_v21 = vld [vmem:[%s5620_s4 + $0x20] sm:$0xff]  ;;  %v965_v24 = vld [vmem:[%s5620_s4 + $0x18] sm:$0xff] }
  0x1a   : > { %1025 = vperm.xlu0 %3461, %v972_v11   ;;  %1015 = vperm.xlu1 %3462, %v970_v12   ;;  %v964_v25 = vld [vmem:[%s5620_s4 + $0x10] sm:$0xff]  ;;  %v963_v28 = vld [vmem:[%s5620_s4 + $0x8] sm:$0xff]  ;;  %v962_v29 = vld [vmem:[%s5620_s4] sm:$0xff]  ;;  %s2749_s14 = scalar_lea.sflag [#allocation4], %s474_s17 }
  0x1b   : > { %s2833_s23 = sshll.u32 %s482_s22, 3  ;;  %v2498_v32 = vld [vmem:[%s5624_s8 + $0x18] sm:$0xff]  ;;  %v2497_v33 = vld [vmem:[%s5624_s8 + $0x10] sm:$0xff]  ;;  %v2496_v36 = vld [vmem:[%s5624_s8 + $0x8] sm:$0xff]  ;;  %s475_s22 = scalar_lea.vmem [#allocation3], %s474_s17 }
  0x1c   : > { %s3714_s26 = scalar_lea.vmem %s5702_s1, %s2833_s23  ;;  %v2495_v37 = vld [vmem:[%s5624_s8] sm:$0xff]  ;;  %v2534_v40 = vld [vmem:[%s5626_s10 + $0x18] sm:$0xff]  ;;  %v2533_v41 = vld [vmem:[%s5626_s10 + $0x10] sm:$0xff] }
  0x1d   : > { %s3719_s16 = scalar_lea.vmem %s5703_s0, %s2833_s23  ;;  %v3722_v3 = vld [vmem:[%s3714_s26 + $0x78] sm:$0xff]  ;;  %v3734_v5 = vld [vmem:[%s3714_s26 + $0x70] sm:$0xff]  ;;  %v3746_v7 = vld [vmem:[%s3714_s26 + $0x68] sm:$0xff]  ;;  %s2761_s23 = sshll.u32 %s475_s22, 4  ;;  %s2762_s23 = int_to_ptr.vmem [resolvable:$true] %s2761_s23 }
  0x1e   : > { %v3725_v4 = vld [vmem:[%s3719_s16 + $0x78] sm:$0xff]  ;;  %3111 = vmatpush3.xpose.msk.msra.mxu0 %vm558_vm1, %v3722_v3  ;;  %v3737_v6 = vld [vmem:[%s3719_s16 + $0x70] sm:$0xff]  ;;  %v3749_v8 = vld [vmem:[%s3719_s16 + $0x68] sm:$0xff]  ;;  %1020 = vperm.xlu0 %3461, %v971_v13  }
  0x1f   : > { %3176 = vmatpush3.xpose.msk.msra.mxu1 %vm760_vm2, %v3725_v4  ;;  %3112 = vmatprep.subr.mxu0 %v5630_v1  ;;  %v3758_v9 = vld [vmem:[%s3714_s26 + $0x60] sm:$0xff]  ;;  %v3779_v14 = vld [vmem:[%s3714_s26 + $0x58] sm:$0xff]  ;;  %v3797_v18 = vld [vmem:[%s3714_s26 + $0x50] sm:$0xff] }
  0x20   : > { %3177 = vmatprep.subr.mxu1 %v5630_v1  ;;  %v3761_v10 = vld [vmem:[%s3719_s16 + $0x60] sm:$0xff]  ;;  %v3782_v15 = vld [vmem:[%s3719_s16 + $0x58] sm:$0xff]  ;;  %v3800_v19 = vld [vmem:[%s3719_s16 + $0x50] sm:$0xff]  ;;  %1010 = vperm.xlu1 %3462, %v969_v16  }
  0x21   : > { %v3815_v22 = vld [vmem:[%s3714_s26 + $0x48] sm:$0xff]  ;;  %v3833_v26 = vld [vmem:[%s3714_s26 + $0x40] sm:$0xff]  ;;  %v3851_v30 = vld [vmem:[%s3714_s26 + $0x38] sm:$0xff] }
  0x22   : > { %3113 = vmatpush3.xpose.msk.msra.mxu0 %vm558_vm1, %v3734_v5  ;;  %1005 = vperm.xlu0 %3461, %v968_v17   ;;  %v3818_v23 = vld [vmem:[%s3719_s16 + $0x48] sm:$0xff]  ;;  %v3836_v27 = vld [vmem:[%s3719_s16 + $0x40] sm:$0xff]  ;;  %v3854_v31 = vld [vmem:[%s3719_s16 + $0x38] sm:$0xff] }
  0x23   : > { %3178 = vmatpush3.xpose.msk.msra.mxu1 %vm760_vm2, %v3737_v6  ;;  %3114 = vmatprep.subr.mxu0 %v5630_v1  ;;  %v3869_v34 = vld [vmem:[%s3714_s26 + $0x30] sm:$0xff]  ;;  %v3887_v38 = vld [vmem:[%s3714_s26 + $0x28] sm:$0xff]  ;;  %v3905_v42 = vld [vmem:[%s3714_s26 + $0x20] sm:$0xff] }
  0x24   : > { %3179 = vmatprep.subr.mxu1 %v5630_v1  ;;  %1000 = vperm.xlu1 %3462, %v967_v20   ;;  %v3872_v35 = vld [vmem:[%s3719_s16 + $0x30] sm:$0xff]  ;;  %v3890_v39 = vld [vmem:[%s3719_s16 + $0x28] sm:$0xff]  ;;  %v3908_v43 = vld [vmem:[%s3719_s16 + $0x20] sm:$0xff] }
  0x25   : > { %v2532_v44 = vld [vmem:[%s5626_s10 + $0x8] sm:$0xff]  ;;  %v2531_v45 = vld [vmem:[%s5626_s10] sm:$0xff]  ;;  %v3923_v46 = vld [vmem:[%s3714_s26 + $0x18] sm:$0xff] }
  0x26   : > { %3115 = vmatpush3.xpose.msk.msra.mxu0 %vm558_vm1, %v3746_v7  ;;  %995 = vperm.xlu0 %3461, %v966_v21   ;;  %v3926_v47 = vld [vmem:[%s3719_s16 + $0x18] sm:$0xff]  ;;  %v2658_v48 = vld [vmem:[#allocation2] sm:$0x1]  ;;  %v3935_v49 = vld [vmem:[%s3714_s26 + $0x10] sm:$0xff] }
  0x27   : > { %3180 = vmatpush3.xpose.msk.msra.mxu1 %vm760_vm2, %v3749_v8  ;;  %3116 = vmatprep.subr.mxu0 %v5630_v1  ;;  %v3938_v50 = vld [vmem:[%s3719_s16 + $0x10] sm:$0xff]  ;;  %v3947_v51 = vld [vmem:[%s3714_s26 + $0x8] sm:$0xff]  ;;  %v3959_v53 = vld [vmem:[%s3714_s26] sm:$0xff]  ;;  %s3511_s26 = scalar_lea.vmem %s2762_s23, 16 }
  0x28   : > { %3181 = vmatprep.subr.mxu1 %v5630_v1  ;;  %990 = vperm.xlu1 %3462, %v965_v24   ;;  %v3950_v52 = vld [vmem:[%s3719_s16 + $0x8] sm:$0xff]  ;;  %v3962_v54 = vld [vmem:[%s3719_s16] sm:$0xff]  ;;  %v549_v59 = vld [vmem:[%s5619_s3 + $0x10] sm:$0xff]  ;;  %p3512_p11 = scmp.ne.s32.totalorder %s2762_s23, %s3511_s26  ;;  %s3582_s16 = smov [#allocation3]  }
  0x29   : > { %v547_v55 = vld [vmem:[%s5619_s3] sm:$0xff]  ;;  %v548_v57 = vld [vmem:[%s5619_s3 + $0x8] sm:$0xff]  ;;  %v538_v60 = vld [vmem:[%s5618_s2 + $0x10] sm:$0xff]  ;;  %s3515_s0 = sshll.u32 %s3582_s16, 4  ;;  %s3516_s0 = int_to_ptr.vmem [resolvable:$false] %s3515_s0 }
  0x2a   : > { %3117 = vmatpush3.xpose.msk.msra.mxu0 %vm558_vm1, %v3758_v9  ;;  %985 = vperm.xlu0 %3461, %v964_v25   ;;  %v536_v56 = vld [vmem:[%s5618_s2] sm:$0xff]  ;;  %v537_v58 = vld [vmem:[%s5618_s2 + $0x8] sm:$0xff]  ;;  %v550_v61 = vld [vmem:[%s5619_s3 + $0x18] sm:$0xff]  ;;  %p3513_p12 = pnand %p3512_p11, %p3691_p5  ;;  %s3517_s1 = scalar_lea.vmem %s3516_s0, 32 }
  0x2b   : > { %3182 = vmatpush3.xpose.msk.msra.mxu1 %vm760_vm2, %v3761_v10  ;;  %3118 = vmatprep.subr.mxu0 %v5630_v1  ;;  %v539_v62 = vld [vmem:[%s5618_s2 + $0x18] sm:$0xff]  ;;  %v551_v63 = vld [vmem:[%s5619_s3 + $0x20] sm:$0xff]  ;;  %v552_v2 = vld [vmem:[%s5619_s3 + $0x28] sm:$0xff]  ;;  %p3518_p0 = scmp.lt.s32.totalorder %s2762_s23, %s3516_s0  ;;  %p3519_p1 = scmp.lt.s32.totalorder %s3517_s1, %s3511_s26 }
  0x2c   : > { %3183 = vmatprep.subr.mxu1 %v5630_v1  ;;  %980 = vperm.xlu1 %3462, %v963_v28   ;;  %v540_v0 = vld [vmem:[%s5618_s2 + $0x20] sm:$0xff]  ;;  %v545_v11 = vld [vmem:[%s5618_s2 + $0x48] sm:$0xff]  ;;  %v557_v12 = vld [vmem:[%s5619_s3 + $0x50] sm:$0xf]  ;;  %p3514_p13 = pneg %p3513_p12 }
  0x2d   : > { %v546_v13 = vld [vmem:[%s5618_s2 + $0x50] sm:$0xf]  ;;  %v2183_v16 = vld [vmem:[%s5621_s5] sm:$0xff]  ;;  %v2188_v17 = vld [vmem:[%s5622_s6 + $0x8] sm:$0xff]  ;;  %p3520_p2 = por %p3519_p1, %p3518_p0 }
  0x2e   : > { %3119 = vmatpush3.xpose.msk.msra.mxu0 %vm558_vm1, %v3779_v14  ;;  %975 = vperm.xlu0 %3461, %v962_v29  }
  0x2f   : > { %3184 = vmatpush3.xpose.msk.msra.mxu1 %vm760_vm2, %v3782_v15  ;;  %3120 = vmatprep.subr.mxu0 %v5630_v1  ;;  %p3521_p3 = pnand %p3520_p2, %p3514_p13 }
  0x30   : > { %3185 = vmatprep.subr.mxu1 %v5630_v1  ;;  %2516 = vperm.xlu1 %3462, %v2498_v32  }
  0x32   : > { %3121 = vmatpush3.xpose.msk.msra.mxu0 %vm558_vm1, %v3797_v18  ;;  %2511 = vperm.xlu0 %3461, %v2497_v33  }
  0x33   : > { %3186 = vmatpush3.xpose.msk.msra.mxu1 %vm760_vm2, %v3800_v19  ;;  %3122 = vmatprep.subr.mxu0 %v5630_v1 }
  0x34   : > { %3187 = vmatprep.subr.mxu1 %v5630_v1  ;;  %2506 = vperm.xlu1 %3462, %v2496_v36  }
  0x36   : > { %3123 = vmatpush3.xpose.msk.msra.mxu0 %vm558_vm1, %v3815_v22  ;;  %2501 = vperm.xlu0 %3461, %v2495_v37  }
  0x37   : > { %3188 = vmatpush3.xpose.msk.msra.mxu1 %vm760_vm2, %v3818_v23  ;;  %3124 = vmatprep.subr.mxu0 %v5630_v1 }
  0x38   : > { %3189 = vmatprep.subr.mxu1 %v5630_v1  ;;  %2552 = vperm.xlu1 %3462, %v2534_v40  }
  0x3a   : > { %3125 = vmatpush3.xpose.msk.msra.mxu0 %vm558_vm1, %v3833_v26  ;;  %2547 = vperm.xlu0 %3461, %v2533_v41  }
  0x3b   : > { %3190 = vmatpush3.xpose.msk.msra.mxu1 %vm760_vm2, %v3836_v27  ;;  %3126 = vmatprep.subr.mxu0 %v5630_v1 }
  0x3c   : > { %3191 = vmatprep.subr.mxu1 %v5630_v1  ;;  %2542 = vperm.xlu1 %3462, %v2532_v44  }
  0x3e   : > { %3127 = vmatpush3.xpose.msk.msra.mxu0 %vm558_vm1, %v3851_v30  ;;  %2537 = vperm.xlu0 %3461, %v2531_v45  }
  0x3f   : > { %3192 = vmatpush3.xpose.msk.msra.mxu1 %vm760_vm2, %v3854_v31  ;;  %3128 = vmatprep.subr.mxu0 %v5630_v1 }
  0x40   : > { %3193 = vmatprep.subr.mxu1 %v5630_v1  ;;  %2661 = vperm.xlu1 %3462, %v2658_v48  }
  0x42   : > { %3129 = vmatpush3.xpose.msk.msra.mxu0 %vm558_vm1, %v3869_v34 }
  0x43   : > { %3194 = vmatpush3.xpose.msk.msra.mxu1 %vm760_vm2, %v3872_v35  ;;  %3130 = vmatprep.subr.mxu0 %v5630_v1 }
  0x44   : > { %3195 = vmatprep.subr.mxu1 %v5630_v1 }
  0x46   : > { %3131 = vmatpush3.xpose.msk.msra.mxu0 %vm558_vm1, %v3887_v38 }
  0x47   : > { %3196 = vmatpush3.xpose.msk.msra.mxu1 %vm760_vm2, %v3890_v39  ;;  %3132 = vmatprep.subr.mxu0 %v5630_v1 }
  0x48   : > { %3197 = vmatprep.subr.mxu1 %v5630_v1 }
  0x4a   : > { %3133 = vmatpush3.xpose.msk.msra.mxu0 %vm558_vm1, %v3905_v42 }
  0x4b   : > { %3198 = vmatpush3.xpose.msk.msra.mxu1 %vm760_vm2, %v3908_v43  ;;  %3134 = vmatprep.subr.mxu0 %v5630_v1 }
  0x4c   : > { %3199 = vmatprep.subr.mxu1 %v5630_v1 }
  0x4e   : > { %3135 = vmatpush3.xpose.msk.msra.mxu0 %vm558_vm1, %v3923_v46 }
  0x4f   : > { %3200 = vmatpush3.xpose.msk.msra.mxu1 %vm760_vm2, %v3926_v47  ;;  %3136 = vmatprep.subr.mxu0 %v5630_v1 }
  0x50   : > { %3201 = vmatprep.subr.mxu1 %v5630_v1 }
  0x52   : > { %3137 = vmatpush3.xpose.msk.msra.mxu0 %vm558_vm1, %v3935_v49 }
  0x53   : > { %3202 = vmatpush3.xpose.msk.msra.mxu1 %vm760_vm2, %v3938_v50  ;;  %3138 = vmatprep.subr.mxu0 %v5630_v1 }
  0x54   : > { %3203 = vmatprep.subr.mxu1 %v5630_v1 }
  0x56   : > { %3139 = vmatpush3.xpose.msk.msra.mxu0 %vm558_vm1, %v3947_v51 }
  0x57   : > { %3204 = vmatpush3.xpose.msk.msra.mxu1 %vm760_vm2, %v3950_v52  ;;  %3140 = vmatprep.subr.mxu0 %v5630_v1 }
  0x58   : > { %3205 = vmatprep.subr.mxu1 %v5630_v1 }
  0x5a   : > { %3141 = vmatpush3.xpose.msk.msra.mxu0 %vm558_vm1, %v3959_v53 }
  0x5b   : > { %3206 = vmatpush3.xpose.msk.msra.mxu1 %vm760_vm2, %v3962_v54  ;;  %3240 = vmatprep.subr.msk.mxu0 %vm558_vm1, %v3722_v3 }
  0x5c   : > { %3278 = vmatprep.subr.msk.mxu1 %vm760_vm2, %v3725_v4 }
  0x5d   : > { %3143 = vmatmul.mubr.msk.f32.vlgmr.msra.gmra.mxu0 %vm558_vm1, %v547_v55 }
  0x5e   : > { %3208 = vmatmul.mubr.msk.f32.vlgmr.msra.gmra.mxu1 %vm760_vm2, %v536_v56  ;;  %3145 = vmatprep.mubr.msk.f32.mxu0 %vm3574_vm0, %v5630_v1 }
  0x5f   : > { %3210 = vmatprep.mubr.msk.f32.mxu1 %vm3574_vm0, %v5630_v1  ;;  %3241 = vmatpush3.xpose.msk.msra.mxu0 %vm558_vm1, %v3722_v3  ;;  %v541_v3 = vld [vmem:[%s5618_s2 + $0x28] sm:$0xff] }
  0x60   : > { %3279 = vmatpush3.xpose.msk.msra.mxu1 %vm760_vm2, %v3725_v4  ;;  %3242 = vmatprep.subr.msk.mxu0 %vm558_vm1, %v3734_v5  ;;  %v553_v4 = vld [vmem:[%s5619_s3 + $0x30] sm:$0xff] }
  0x61   : > { %3280 = vmatprep.subr.msk.mxu1 %vm760_vm2, %v3737_v6  ;;  %3146 = vmatmul.mubr.msk.f32.gmra.mxu0 %vm558_vm1, %v548_v57 }
  0x62   : > { %3211 = vmatmul.mubr.msk.f32.gmra.mxu1 %vm760_vm2, %v537_v58  ;;  %3148 = vmatprep.mubr.msk.f32.mxu0 %vm3574_vm0, %v5630_v1 }
  0x63   : > { %3213 = vmatprep.mubr.msk.f32.mxu1 %vm3574_vm0, %v5630_v1  ;;  %3243 = vmatpush3.xpose.msk.msra.mxu0 %vm558_vm1, %v3734_v5  ;;  %v542_v5 = vld [vmem:[%s5618_s2 + $0x30] sm:$0xff] }
  0x64   : > { %3281 = vmatpush3.xpose.msk.msra.mxu1 %vm760_vm2, %v3737_v6  ;;  %3244 = vmatprep.subr.msk.mxu0 %vm558_vm1, %v3746_v7  ;;  %v554_v6 = vld [vmem:[%s5619_s3 + $0x38] sm:$0xff] }
  0x65   : > { %3282 = vmatprep.subr.msk.mxu1 %vm760_vm2, %v3749_v8  ;;  %3149 = vmatmul.mubr.msk.f32.gmra.mxu0 %vm558_vm1, %v549_v59 }
  0x66   : > { %3214 = vmatmul.mubr.msk.f32.gmra.mxu1 %vm760_vm2, %v538_v60  ;;  %3151 = vmatprep.mubr.msk.f32.mxu0 %vm3574_vm0, %v5630_v1 }
  0x67   : > { %3216 = vmatprep.mubr.msk.f32.mxu1 %vm3574_vm0, %v5630_v1  ;;  %3245 = vmatpush3.xpose.msk.msra.mxu0 %vm558_vm1, %v3746_v7  ;;  %v543_v7 = vld [vmem:[%s5618_s2 + $0x38] sm:$0xff] }
  0x68   : > { %3283 = vmatpush3.xpose.msk.msra.mxu1 %vm760_vm2, %v3749_v8  ;;  %3246 = vmatprep.subr.msk.mxu0 %vm558_vm1, %v3758_v9  ;;  %v555_v8 = vld [vmem:[%s5619_s3 + $0x40] sm:$0xff] }
  0x69   : > { %3284 = vmatprep.subr.msk.mxu1 %vm760_vm2, %v3761_v10  ;;  %3152 = vmatmul.mubr.msk.f32.gmra.mxu0 %vm558_vm1, %v550_v61 }
  0x6a   : > { %3217 = vmatmul.mubr.msk.f32.gmra.mxu1 %vm760_vm2, %v539_v62  ;;  %3154 = vmatprep.mubr.msk.f32.mxu0 %vm3574_vm0, %v5630_v1 }
  0x6b   : > { %3219 = vmatprep.mubr.msk.f32.mxu1 %vm3574_vm0, %v5630_v1  ;;  %3247 = vmatpush3.xpose.msk.msra.mxu0 %vm558_vm1, %v3758_v9  ;;  %v544_v9 = vld [vmem:[%s5618_s2 + $0x40] sm:$0xff] }
  0x6c   : > { %3285 = vmatpush3.xpose.msk.msra.mxu1 %vm760_vm2, %v3761_v10  ;;  %3248 = vmatprep.subr.msk.mxu0 %vm558_vm1, %v3779_v14  ;;  %v556_v10 = vld [vmem:[%s5619_s3 + $0x48] sm:$0xff] }
  0x6d   : > { %3286 = vmatprep.subr.msk.mxu1 %vm760_vm2, %v3782_v15  ;;  %3155 = vmatmul.mubr.msk.f32.gmra.mxu0 %vm558_vm1, %v551_v63 }
  0x6e   : > { %3220 = vmatmul.mubr.msk.f32.gmra.mxu1 %vm760_vm2, %v540_v0  ;;  %3157 = vmatprep.mubr.msk.f32.mxu0 %vm3574_vm0, %v5630_v1 }
  0x6f   : > { %3222 = vmatprep.mubr.msk.f32.mxu1 %vm3574_vm0, %v5630_v1  ;;  %3249 = vmatpush3.xpose.msk.msra.mxu0 %vm558_vm1, %v3779_v14 }
  0x70   : > { %3287 = vmatpush3.xpose.msk.msra.mxu1 %vm760_vm2, %v3782_v15  ;;  %3250 = vmatprep.subr.msk.mxu0 %vm558_vm1, %v3797_v18  ;;  %v2187_v15 = vld [vmem:[%s5622_s6] sm:$0xff] }
  0x71   : > { %3288 = vmatprep.subr.msk.mxu1 %vm760_vm2, %v3800_v19  ;;  %3158 = vmatmul.mubr.msk.f32.gmra.mxu0 %vm558_vm1, %v552_v2 }
  0x72   : > { %3223 = vmatmul.mubr.msk.f32.gmra.mxu1 %vm760_vm2, %v541_v3  ;;  %3160 = vmatprep.mubr.msk.f32.mxu0 %vm3574_vm0, %v5630_v1 }
  0x73   : > { %3225 = vmatprep.mubr.msk.f32.mxu1 %vm3574_vm0, %v5630_v1  ;;  %3251 = vmatpush3.xpose.msk.msra.mxu0 %vm558_vm1, %v3797_v18  ;;  %v2184_v18 = vld [vmem:[%s5621_s5 + $0x8] sm:$0xff] }
  0x74   : > { %3289 = vmatpush3.xpose.msk.msra.mxu1 %vm760_vm2, %v3800_v19  ;;  %3252 = vmatprep.subr.msk.mxu0 %vm558_vm1, %v3815_v22 }
  0x75   : > { %3290 = vmatprep.subr.msk.mxu1 %vm760_vm2, %v3818_v23  ;;  %3161 = vmatmul.mubr.msk.f32.gmra.mxu0 %vm558_vm1, %v553_v4 }
  0x76   : > { %3226 = vmatmul.mubr.msk.f32.gmra.mxu1 %vm760_vm2, %v542_v5  ;;  %3163 = vmatprep.mubr.msk.f32.mxu0 %vm3574_vm0, %v5630_v1  ;;  %v5638_v5 = vmov 683565275  }
  0x77   : > { %3228 = vmatprep.mubr.msk.f32.mxu1 %vm3574_vm0, %v5630_v1  ;;  %3253 = vmatpush3.xpose.msk.msra.mxu0 %vm558_vm1, %v3815_v22 }
  0x78   : > { %3291 = vmatpush3.xpose.msk.msra.mxu1 %vm760_vm2, %v3818_v23  ;;  %3254 = vmatprep.subr.msk.mxu0 %vm558_vm1, %v3833_v26 }
  0x79   : > { %3292 = vmatprep.subr.msk.mxu1 %vm760_vm2, %v3836_v27  ;;  %3164 = vmatmul.mubr.msk.f32.gmra.mxu0 %vm558_vm1, %v554_v6 }
  0x7a   : > { %3229 = vmatmul.mubr.msk.f32.gmra.mxu1 %vm760_vm2, %v543_v7  ;;  %3166 = vmatprep.mubr.msk.f32.mxu0 %vm3574_vm0, %v5630_v1  ;;  %v5636_v7 = vmov 2475754826  }
  0x7b   : > { %3231 = vmatprep.mubr.msk.f32.mxu1 %vm3574_vm0, %v5630_v1  ;;  %3255 = vmatpush3.xpose.msk.msra.mxu0 %vm558_vm1, %v3833_v26 }
  0x7c   : > { %3293 = vmatpush3.xpose.msk.msra.mxu1 %vm760_vm2, %v3836_v27  ;;  %3256 = vmatprep.subr.msk.mxu0 %vm558_vm1, %v3851_v30 }
  0x7d   : > { %3294 = vmatprep.subr.msk.mxu1 %vm760_vm2, %v3854_v31  ;;  %3167 = vmatmul.mubr.msk.f32.gmra.mxu0 %vm558_vm1, %v555_v8 }
  0x7e   : > { %3232 = vmatmul.mubr.msk.f32.gmra.mxu1 %vm760_vm2, %v544_v9  ;;  %3169 = vmatprep.mubr.msk.f32.mxu0 %vm3574_vm0, %v5630_v1 }
  0x7f   : > { %3234 = vmatprep.mubr.msk.f32.mxu1 %vm3574_vm0, %v5630_v1  ;;  %3257 = vmatpush3.xpose.msk.msra.mxu0 %vm558_vm1, %v3851_v30 }
  0x80   : > { %3295 = vmatpush3.xpose.msk.msra.mxu1 %vm760_vm2, %v3854_v31  ;;  %3258 = vmatprep.subr.msk.mxu0 %vm558_vm1, %v3869_v34 }
  0x81   : > { %3296 = vmatprep.subr.msk.mxu1 %vm760_vm2, %v3872_v35  ;;  %3170 = vmatmul.mubr.msk.f32.gmra.mxu0 %vm558_vm1, %v556_v10 }
  0x82   : > { %3235 = vmatmul.mubr.msk.f32.gmra.mxu1 %vm760_vm2, %v545_v11  ;;  %3172 = vmatprep.mubr.msk.f32.mxu0 %vm3574_vm0, %v5630_v1 }
  0x83   : > { %3237 = vmatprep.mubr.msk.f32.mxu1 %vm3574_vm0, %v5630_v1  ;;  %3259 = vmatpush3.xpose.msk.msra.mxu0 %vm558_vm1, %v3869_v34 }
  0x84   : > { %3297 = vmatpush3.xpose.msk.msra.mxu1 %vm760_vm2, %v3872_v35  ;;  %3260 = vmatprep.subr.msk.mxu0 %vm558_vm1, %v3887_v38 }
  0x85   : > { %3298 = vmatprep.subr.msk.mxu1 %vm760_vm2, %v3890_v39  ;;  %3173 = vmatmul.mubr.msk.f32.gmra.mxu0 %vm558_vm1, %v557_v12  ;;  %v5634_v12 = vmov 2131351028  }
  0x86   : > { %3238 = vmatmul.mubr.msk.f32.gmra.mxu1 %vm760_vm2, %v546_v13  ;;  %3272 = vmatprep.mubr.msk.f32.mxu0 %vm558_vm1, %v2187_v15 }
  0x87   : > { %3261 = vmatpush3.xpose.msk.msra.mxu0 %vm558_vm1, %v3887_v38  ;;  %3310 = vmatprep.mubr.msk.f32.mxu1 %vm760_vm2, %v2183_v16  ;;  %v5648_v16 = vmov 2102212464  }
  0x88   : > { %3299 = vmatpush3.xpose.msk.msra.mxu1 %vm760_vm2, %v3890_v39  ;;  %3262 = vmatprep.subr.msk.mxu0 %vm558_vm1, %v3905_v42 }
  0x89   : > { %3300 = vmatprep.subr.msk.mxu1 %vm760_vm2, %v3908_v43 }
  0x8b   : > { %3263 = vmatpush3.xpose.msk.msra.mxu0 %vm558_vm1, %v3905_v42 }
  0x8c   : > { %3301 = vmatpush3.xpose.msk.msra.mxu1 %vm760_vm2, %v3908_v43  ;;  %3264 = vmatprep.subr.msk.mxu0 %vm558_vm1, %v3923_v46 }
  0x8d   : > { %3302 = vmatprep.subr.msk.mxu1 %vm760_vm2, %v3926_v47 }
  0x8f   : > { %3265 = vmatpush3.xpose.msk.msra.mxu0 %vm558_vm1, %v3923_v46 }
  0x90   : > { %3303 = vmatpush3.xpose.msk.msra.mxu1 %vm760_vm2, %v3926_v47  ;;  %3266 = vmatprep.subr.msk.mxu0 %vm558_vm1, %v3935_v49 }
  0x91   : > { %3304 = vmatprep.subr.msk.mxu1 %vm760_vm2, %v3938_v50 }
  0x93   : > { %3267 = vmatpush3.xpose.msk.msra.mxu0 %vm558_vm1, %v3935_v49 }
  0x94   : > { %3305 = vmatpush3.xpose.msk.msra.mxu1 %vm760_vm2, %v3938_v50  ;;  %3268 = vmatprep.subr.msk.mxu0 %vm558_vm1, %v3947_v51 }
  0x95   : > { %3306 = vmatprep.subr.msk.mxu1 %vm760_vm2, %v3950_v52  ;;  %v4224_v14 = vpop.permute.xlu0 %1025  ;;  %v4244_v20 = vpop.permute.xlu1 %1015 }
  0x97   : > { %3269 = vmatpush3.xpose.msk.msra.mxu0 %vm558_vm1, %v3947_v51 }
  0x98   : > { %3307 = vmatpush3.xpose.msk.msra.mxu1 %vm760_vm2, %v3950_v52  ;;  %3270 = vmatprep.subr.msk.mxu0 %vm558_vm1, %v3959_v53 }
  0x99   : > { %3308 = vmatprep.subr.msk.mxu1 %vm760_vm2, %v3962_v54  ;;  %v4240_v19 = vpop.permute.xlu0 %1020 }
  0x9b   : > { %3271 = vmatpush3.xpose.msk.msra.mxu0 %vm558_vm1, %v3959_v53  ;;  %v4248_v22 = vpop.permute.xlu1 %1010 }
  0x9c   : > { %3309 = vmatpush3.xpose.msk.msra.mxu1 %vm760_vm2, %v3962_v54 }
  0x9d   : > { %v4246_v21 = vpop.permute.xlu0 %1005 }
  0x9e   : > { %3273 = vmatmul.mubr.msk.f32.vlgmr.msra.gmra.mxu0 %vm558_vm1, %v2188_v17 }
  0x9f   : > { %3311 = vmatmul.mubr.msk.f32.vlgmr.msra.gmra.mxu1 %vm760_vm2, %v2184_v18  ;;  %v4252_v24 = vpop.permute.xlu1 %1000 }
  0xa1   : > { %v4250_v23 = vpop.permute.xlu0 %995 }
  0xa3   : > { %v4256_v26 = vpop.permute.xlu1 %990 }
  0xa5   : > { %v4254_v25 = vpop.permute.xlu0 %985 }
  0xa7   : > { %v981_v34 = vpop.permute.xlu1 %980 }
  0xa9   : > { %v976_v27 = vpop.permute.xlu0 %975 }
 0x11d   : > { %v706_v28 = vpop.f32.mrf.mxu0 }
 0x11e   : > { %v908_v29 = vpop.f32.mrf.mxu1 }
 0x11f   : > { %v909_v30 = vadd.f32 %v908_v29, %v706_v28  ;;  %v3144_v31 = vpop.f32.mrf.mxu0 }
 0x120   : > { %v3209_v32 = vpop.f32.mrf.mxu1 }
 0x121   : > { %v4258_v33 = vadd.f32 %v976_v27, %v909_v30  ;;  %v711_v35 = vpop.f32.mrf.mxu0  ;;  %v5656_v27 = vmov 920167782   ;;  %v5640_v30 = vmov 1326507024  }
 0x122   : > { %v913_v36 = vpop.f32.mrf.mxu1 }
 0x123   : > { %5704 = vst [vmem:[#allocation6_spill] sm:$0xff] %v4258_v33  ;;  %v1042_v37 = vand.u32 2139095040, %v4258_v33  ;;  %v914_v38 = vadd.f32 %v913_v36, %v711_v35  ;;  %v3147_v39 = vpop.f32.mrf.mxu0  ;;  %v5632_v46 = vand.u32 2147483647, %v4258_v33 }
 0x124   : > { %v3212_v40 = vpop.f32.mrf.mxu1 }
 0x125   : > { %v1043_v41 = vshrl.u32 %v1042_v37, 23  ;;  %v4261_v42 = vadd.f32 %v981_v34, %v914_v38  ;;  %v716_v43 = vpop.f32.mrf.mxu0  ;;  %v1046_v56 = vand.u32 8388607, %v5632_v46 }
 0x126   : > { %v918_v44 = vpop.f32.mrf.mxu1 }
 0x127   : > { %5705 = vst [vmem:[#allocation7_spill] sm:$0xff] %v4261_v42  ;;  %v2890_v45 = vadd.s32 4294967169, %v1043_v41  ;;  %v1146_v47 = vand.u32 2139095040, %v4261_v42  ;;  %v4265_v48 = vadd.f32 %v918_v44, %v716_v43  ;;  %v3150_v49 = vpop.f32.mrf.mxu0  ;;  %v1047_v3 = vor.u32 8388608, %v1046_v56 }
 0x128   : > { %v3215_v50 = vpop.f32.mrf.mxu1 }
 0x129   : > { %v1049_v51 = vadd.s32 1, %v2890_v45  ;;  %v1147_v52 = vshrl.u32 %v1146_v47, 23  ;;  %v721_v53 = vpop.f32.mrf.mxu0  ;;  %v5633_v47 = vand.u32 2147483647, %v4261_v42 }
 0x12a   : > { %v923_v54 = vpop.f32.mrf.mxu1 }
 0x12b   : > { %vm1050_vm3 = vcmp.gt.s32.totalorder %v1049_v51, 0  ;;  %v4267_v55 = vadd.f32 %v923_v54, %v721_v53  ;;  %v2894_v58 = vadd.s32 4294967169, %v1147_v52  ;;  %v3153_v59 = vpop.f32.mrf.mxu0 }
 0x12c   : > { %v1051_v57 = vsel %vm1050_vm3, %v1049_v51, 0  ;;  %v3218_v60 = vpop.f32.mrf.mxu1  ;;  %v4330_v59 = vshll.u32 %v1047_v3, 8 }
 0x12d   : > { %v1053_v61 = vand.u32 31, %v1051_v57  ;;  %v4271_v62 = vpop.f32.mrf.mxu0  ;;  %v1153_v2 = vadd.s32 1, %v2894_v58  ;;  %v4277_v4 = vshrl.u32 %v1051_v57, 5 }
 0x12e   : > { %v4273_v63 = vpop.f32.mrf.mxu1 }
 0x12f   : > { %v4275_v0 = vsub.s32 32, %v1053_v61  ;;  %v1056_v6 = vshll.u32 %v5638_v5, %v1053_v61  ;;  %v1059_v8 = vshll.u32 %v5636_v7, %v1053_v61  ;;  %v3156_v9 = vpop.f32.mrf.mxu0  ;;  %v1062_v15 = vshll.u32 %v5634_v12, %v1053_v61 }
 0x130   : > { %v3221_v10 = vpop.f32.mrf.mxu1  ;;  %v1065_v18 = vshll.u32 %v5648_v16, %v1053_v61  ;;  %v1068_v29 = vshll.u32 %v5656_v27, %v1053_v61  ;;  %vm1154_vm4 = vcmp.gt.s32.totalorder %v1153_v2, 0  ;;  %vm1071_vm5 = vcmp.lt.s32.totalorder %v4277_v4, 1 }
 0x131   : > { %v1057_v11 = vshrl.u32 %v5636_v7, %v4275_v0  ;;  %v1060_v13 = vshrl.u32 %v5634_v12, %v4275_v0  ;;  %v1063_v17 = vshrl.u32 %v5648_v16, %v4275_v0  ;;  %v1066_v28 = vshrl.u32 %v5656_v27, %v4275_v0  ;;  %v4294_v32 = vpop.f32.mrf.mxu0 }
 0x132   : > { %v1069_v31 = vshrl.u32 %v5640_v30, %v4275_v0  ;;  %v4296_v34 = vpop.f32.mrf.mxu1  ;;  %v1155_v40 = vsel %vm1154_vm4, %v1153_v2, 0  ;;  %vm1074_vm6 = vcmp.lt.s32.totalorder %v4277_v4, 4  ;;  %vm1073_vm7 = vcmp.lt.s32.totalorder %v4277_v4, 3 }
 0x133   : > { %v4298_v35 = vor.u32 %v1057_v11, %v1056_v6  ;;  %v4300_v36 = vor.u32 %v1060_v13, %v1059_v8  ;;  %v1064_v37 = vor.u32 %v1063_v17, %v1062_v15  ;;  %v1067_v38 = vor.u32 %v1066_v28, %v1065_v18  ;;  %v3159_v41 = vpop.f32.mrf.mxu0 }
 0x134   : > { %v1070_v39 = vor.u32 %v1069_v31, %v1068_v29  ;;  %v3224_v43 = vpop.f32.mrf.mxu1  ;;  %vm1072_vm8 = vcmp.lt.s32.totalorder %v4277_v4, 2  ;;  %v1157_v56 = vand.u32 31, %v1155_v40  ;;  %v1150_v2 = vand.u32 8388607, %v5633_v47 }
 0x135   : > { %v1079_v44 = vsel %vm1071_vm5, %v4298_v35, %v4300_v36  ;;  %v1083_v45 = vsel %vm1071_vm5, %v4300_v36, %v1064_v37  ;;  %v1080_v49 = vsel %vm1074_vm6, %v1067_v38, 920167782  ;;  %v4317_v51 = vpop.f32.mrf.mxu0  ;;  %v4336_v6 = vadd.f32 %v4254_v25, %v4265_v48 }
 0x136   : > { %v1084_v50 = vsel %vm1074_vm6, %v1070_v39, 1326507024  ;;  %v4319_v52 = vpop.f32.mrf.mxu1  ;;  %v1081_v53 = vsel %vm1073_vm7, %v1064_v37, %v1080_v49  ;;  %v4342_v10 = vshrl.u32 %v1155_v40, 5  ;;  %v4344_v11 = vsub.s32 32, %v1157_v56 }
 0x137   : > { %v1085_v54 = vsel %vm1073_vm7, %v1067_v38, %v1084_v50  ;;  %v1082_v57 = vsel %vm1072_vm8, %v1079_v44, %v1081_v53  ;;  %v3162_v60 = vpop.f32.mrf.mxu0  ;;  %5706 = vst [vmem:[#allocation8_spill] sm:$0xff] %v4336_v6  ;;  %v1160_v18 = vshll.u32 %v5638_v5, %v1157_v56  ;;  %v1163_v25 = vshll.u32 %v5636_v7, %v1157_v56 }
 0x138   : > { %v1086_v58 = vsel %vm1072_vm8, %v1083_v45, %v1085_v54  ;;  %v3227_v61 = vpop.f32.mrf.mxu1  ;;  %v4347_v15 = vmul.u32.u64.low %v4330_v59, %v1082_v57  ;;  %v4348_v17 = vmul.u32.u64.high %v4330_v59, %v1082_v57, %v4347_v15  ;;  %v1161_v48 = vshrl.u32 %v5636_v7, %v4344_v11 }
 0x139   : > { %v4339_v8 = vmul.u32.u64.low %v4330_v59, %v1086_v58  ;;  %v4340_v9 = vmul.u32.u64.high %v4330_v59, %v1086_v58, %v4339_v8  ;;  %v741_v13 = vpop.f32.mrf.mxu0  ;;  %v1164_v28 = vshrl.u32 %v5634_v12, %v4344_v11  ;;  %v1166_v29 = vshll.u32 %v5634_v12, %v1157_v56 }
 0x13a   : > { %v943_v3 = vpop.f32.mrf.mxu1  ;;  %5708 = vst [vmem:[#allocation10_spill] sm:$0xff] %v4347_v15  ;;  %v1167_v31 = vshrl.u32 %v5648_v16, %v4344_v11  ;;  %v1169_v40 = vshll.u32 %v5648_v16, %v1157_v56  ;;  %v1170_v41 = vshrl.u32 %v5656_v27, %v4344_v11  ;;  %v1172_v43 = vshll.u32 %v5656_v27, %v1157_v56 }
 0x13b   : > { %5707 = vst [vmem:[#allocation9_spill] sm:$0xff] %v4340_v9  ;;  %v3165_v38 = vpop.f32.mrf.mxu0  ;;  %v1162_v44 = vor.u32 %v1161_v48, %v1160_v18  ;;  %v1165_v45 = vor.u32 %v1164_v28, %v1163_v25  ;;  %v1173_v50 = vshrl.u32 %v5640_v30, %v4344_v11  ;;  %v1151_v57 = vor.u32 8388608, %v1150_v2 }
 0x13c   : > { %v3230_v39 = vpop.f32.mrf.mxu1  ;;  %v1168_v49 = vor.u32 %v1167_v31, %v1166_v29  ;;  %v1171_v58 = vor.u32 %v1170_v41, %v1169_v40  ;;  %v1250_v60 = vand.u32 2139095040, %v4336_v6  ;;  %v1076_v61 = vsel %vm1074_vm6, %v1064_v37, 2102212464 }
 0x13d   : > { %v4366_v53 = vpop.f32.mrf.mxu0  ;;  %v1174_v8 = vor.u32 %v1173_v50, %v1172_v43  ;;  %vm1175_vm9 = vcmp.lt.s32.totalorder %v4342_v10, 1  ;;  %vm1178_vm10 = vcmp.lt.s32.totalorder %v4342_v10, 4  ;;  %vm1177_vm11 = vcmp.lt.s32.totalorder %v4342_v10, 3 }
 0x13e   : > { %v4368_v54 = vpop.f32.mrf.mxu1  ;;  %v1183_v25 = vsel %vm1175_vm9, %v1162_v44, %v1165_v45  ;;  %v1184_v2 = vsel %vm1178_vm10, %v1171_v58, 920167782  ;;  %v1187_v48 = vsel %vm1175_vm9, %v1165_v45, %v1168_v49  ;;  %v1055_v37 = vshrl.u32 %v5638_v5, %v4275_v0 }
 0x13f   : > { %v3168_v56 = vpop.f32.mrf.mxu0  ;;  %vm1176_vm12 = vcmp.lt.s32.totalorder %v4342_v10, 2  ;;  %v1185_v28 = vsel %vm1177_vm11, %v1168_v49, %v1184_v2  ;;  %v1188_v29 = vsel %vm1178_vm10, %v1174_v8, 1326507024  ;;  %v1191_v41 = vshll.u32 %v1151_v57, 8 }
 0x140   : > { %v3233_v18 = vpop.f32.mrf.mxu1  ;;  %v1186_v39 = vsel %vm1176_vm12, %v1183_v25, %v1185_v28  ;;  %v1189_v40 = vsel %vm1177_vm11, %v1171_v58, %v1188_v29  ;;  %v1075_v0 = vsel %vm1071_vm5, %v1055_v37, %v4298_v35  ;;  %v1077_v43 = vsel %vm1073_vm7, %v4300_v36, %v1076_v61 }
 0x141   : > { %v4389_v31 = vpop.f32.mrf.mxu0  ;;  %v1190_v50 = vsel %vm1176_vm12, %v1187_v48, %v1189_v40  ;;  %v4407_v8 = vadd.f32 %v4256_v26, %v4267_v55  ;;  %v1097_v58 = vadd.s32 1, %v4348_v17  ;;  %v1251_v35 = vshrl.u32 %v1250_v60, 23 }
 0x142   : > { %v4391_v38 = vpop.f32.mrf.mxu1  ;;  %v4410_v57 = vmul.u32.u64.low %v1191_v41, %v1186_v39  ;;  %v4411_v25 = vmul.u32.u64.high %v1191_v41, %v1186_v39, %v4410_v57  ;;  %vm1096_vm13 = vc.u32 %v4340_v9, %v4347_v15  ;;  %v929_v2 = vadd.f32 %v4273_v63, %v4271_v62 }
 0x143   : > { %5709 = vst [vmem:[#allocation11_spill] sm:$0xff] %v4407_v8  ;;  %v3171_v56 = vpop.f32.mrf.mxu0  ;;  %v4416_v36 = vmul.u32.u64.low %v1191_v41, %v1190_v50  ;;  %v4417_v61 = vmul.u32.u64.high %v1191_v41, %v1190_v50, %v4416_v36  ;;  %v1078_v48 = vsel %vm1072_vm8, %v1075_v0, %v1077_v43  ;;  %v934_v37 = vadd.f32 %v4296_v34, %v4294_v32 }
 0x144   : > { %v3236_v18 = vpop.f32.mrf.mxu1  ;;  %5710 = vst [vmem:[#allocation12_spill] sm:$0xff] %v4410_v57  ;;  %v939_v60 = vadd.f32 %v4319_v52, %v4317_v51  ;;  %v944_v28 = vadd.f32 %v943_v3, %v741_v13  ;;  %v1098_v40 = vsel %vm1096_vm13, %v1097_v58, %v4348_v17  ;;  %v1180_v62 = vsel %vm1178_vm10, %v1168_v49, 2102212464 }
 0x145   : > { %5711 = vst [vmem:[#allocation13_spill] sm:$0xff] %v4417_v61  ;;  %v4421_v26 = vpop.f32.mrf.mxu0  ;;  %v1094_v63 = vmul.u32 %v4330_v59, %v1078_v48  ;;  %v1159_v4 = vshrl.u32 %v5638_v5, %v4344_v11  ;;  %v1354_v0 = vand.u32 2139095040, %v4407_v8  ;;  %v2898_v43 = vadd.s32 4294967169, %v1251_v35 }
 0x146   : > { %v4423_v55 = vpop.f32.mrf.mxu1  ;;  %v1181_v51 = vsel %vm1177_vm11, %v1165_v45, %v1180_v62  ;;  %v4443_v52 = vadd.f32 %v4250_v23, %v929_v2  ;;  %v1201_v13 = vadd.s32 1, %v4411_v25  ;;  %vm1200_vm14 = vc.u32 %v4417_v61, %v4410_v57 }
 0x147   : > { %v3174_v29 = vpop.f32.mrf.mxu0  ;;  %v1099_v32 = vadd.s32 %v1098_v40, %v1094_v63  ;;  %v1179_v34 = vsel %vm1175_vm9, %v1159_v4, %v1162_v44  ;;  %v1355_v59 = vshrl.u32 %v1354_v0, 23  ;;  %v4449_v11 = vadd.f32 %v4252_v24, %v934_v37 }
 0x148   : > { %v3239_v39 = vpop.f32.mrf.mxu1  ;;  %5712 = vst [vmem:[#allocation14_spill] sm:$0xff] %v4443_v52  ;;  %v1182_v3 = vsel %vm1176_vm12, %v1179_v34, %v1181_v51  ;;  %v1257_v44 = vadd.s32 1, %v2898_v43  ;;  %v1458_v49 = vand.u32 2139095040, %v4443_v52  ;;  %v1202_v45 = vsel %vm1200_vm14, %v1201_v13, %v4411_v25 }
 0x149   : > { %v1100_v17 = vadd.s32 536870912, %v1099_v32  ;;  %v1198_v23 = vmul.u32 %v1191_v41, %v1182_v3  ;;  %v2902_v50 = vadd.s32 4294967169, %v1355_v59  ;;  %v1562_v56 = vand.u32 2139095040, %v4449_v11 }
 0x14a   : > { %v4457_v18 = vadd.f32 %v4246_v21, %v939_v60  ;;  %vm1258_vm15 = vcmp.gt.s32.totalorder %v1257_v44, 0  ;;  %v1459_v35 = vshrl.u32 %v1458_v49, 23  ;;  %v4466_v60 = vadd.f32 %v4248_v22, %v944_v28 }
 0x14b   : > { %v4459_v58 = vshrl.u32 %v1100_v17, 30  ;;  %v1203_v24 = vadd.s32 %v1202_v45, %v1198_v23  ;;  %v1361_v10 = vadd.s32 1, %v2902_v50  ;;  %v1563_v36 = vshrl.u32 %v1562_v56, 23 }
 0x14c   : > { %v1666_v2 = vand.u32 2139095040, %v4457_v18  ;;  %v1259_v48 = vsel %vm1258_vm15, %v1257_v44, 0  ;;  %v2906_v41 = vadd.s32 4294967169, %v1459_v35  ;;  %v1770_v51 = vand.u32 2139095040, %v4466_v60 }
 0x14d   : > { %5713 = vst [vmem:[#allocation15_spill] sm:$0xff] %v4459_v58  ;;  %v1102_v37 = vshll.u32 %v4459_v58, 30  ;;  %v1204_v25 = vadd.s32 536870912, %v1203_v24  ;;  %v4463_v29 = vand.u32 31, %v1259_v48  ;;  %vm1362_vm3 = vcmp.gt.s32.totalorder %v1361_v10, 0 }
 0x14e   : > { %v2910_v39 = vadd.s32 4294967169, %v1563_v36  ;;  %v1667_v21 = vshrl.u32 %v1666_v2, 23  ;;  %v1465_v63 = vadd.s32 1, %v2906_v41  ;;  %v1363_v4 = vsel %vm1362_vm3, %v1361_v10, 0 }
 0x14f   : > { %5714 = vst [vmem:[#allocation16_spill] sm:$0xff] %v4463_v29  ;;  %v4468_v40 = vsub.s32 %v1099_v32, %v1102_v37  ;;  %v4470_v62 = vshrl.u32 %v1204_v25, 30  ;;  %v4473_v0 = vsub.s32 32, %v4463_v29  ;;  %v4478_v3 = vand.u32 31, %v1363_v4 }
 0x150   : > { %v1569_v43 = vadd.s32 1, %v2910_v39  ;;  %v2914_v34 = vadd.s32 4294967169, %v1667_v21  ;;  %vm1466_vm4 = vcmp.gt.s32.totalorder %v1465_v63, 0  ;;  %v4480_v22 = vshrl.u32 %v1259_v48, 5 }
 0x151   : > { %5715 = vst [vmem:[#allocation17_spill] sm:$0xff] %v4468_v40  ;;  %5716 = vst [vmem:[#allocation18_spill] sm:$0xff] %v4470_v62  ;;  %v1105_v13 = vsub.s32 0, %v4468_v40  ;;  %v1206_v59 = vshll.u32 %v4470_v62, 30  ;;  %v1274_v28 = vshrl.u32 %v5656_v27, %v4473_v0  ;;  %v1273_v17 = vshll.u32 %v5648_v16, %v4463_v29 }
 0x152   : > { %5717 = vst [vmem:[#allocation19_spill] sm:$0xff] %v4473_v0  ;;  %5718 = vst [vmem:[#allocation20_spill] sm:$0xff] %v4478_v3  ;;  %vm1570_vm5 = vcmp.gt.s32.totalorder %v1569_v43, 0  ;;  %v1673_v32 = vadd.s32 1, %v2914_v34  ;;  %v4488_v44 = vshrl.u32 %v5640_v30, %v4473_v0  ;;  %v1467_v49 = vsel %vm1466_vm4, %v1465_v63, 0 }
 0x153   : > { %5719 = vst [vmem:[#allocation21_spill] sm:$0xff] %v4480_v22  ;;  %v1771_v45 = vshrl.u32 %v1770_v51, 23  ;;  %v2891_v23 = vmin.u32 %v1105_v13, %v4468_v40  ;;  %v4491_v50 = vsub.s32 %v1203_v24, %v1206_v59  ;;  %v4494_v56 = vsub.s32 32, %v4478_v3 }
 0x154   : > { %5720 = vst [vmem:[#allocation22_spill] sm:$0xff] %v4488_v44  ;;  %v949_v35 = vadd.f32 %v4368_v54, %v4366_v53  ;;  %v4500_v10 = vshll.u32 %v5656_v27, %v4463_v29  ;;  %vm1282_vm6 = vcmp.lt.s32.totalorder %v4480_v22, 4  ;;  %v1571_v36 = vsel %vm1570_vm5, %v1569_v43, 0 }
 0x155   : > { %5721 = vst [vmem:[#allocation23_spill] sm:$0xff] %v4491_v50  ;;  %5722 = vst [vmem:[#allocation24_spill] sm:$0xff] %v4494_v56  ;;  %v4503_v2 = vor.u32 %v1274_v28, %v1273_v17  ;;  %v4505_v48 = vand.u32 31, %v1467_v49  ;;  %vm1674_vm7 = vcmp.gt.s32.totalorder %v1673_v32, 0  ;;  %v2918_v25 = vadd.s32 4294967169, %v1771_v45 }
 0x156   : > { %5723 = vst [vmem:[#allocation25_spill] sm:$0xff] %v4500_v10  ;;  %v4508_v24 = vadd.f32 %v4244_v20, %v949_v35  ;;  %v954_v53 = vadd.f32 %v4391_v38, %v4389_v31  ;;  %v959_v54 = vadd.f32 %v4423_v55, %v4421_v26  ;;  %v1107_v41 = vclz %v2891_v23 }
 0x157   : > { %5724 = vst [vmem:[#allocation26_spill] sm:$0xff] %v4503_v2  ;;  %5725 = vst [vmem:[#allocation27_spill] sm:$0xff] %v4505_v48  ;;  %v1209_v39 = vsub.s32 0, %v4491_v50  ;;  %v1378_v21 = vshrl.u32 %v5656_v27, %v4494_v56  ;;  %v4519_v63 = vand.u32 31, %v1571_v36  ;;  %v4523_v20 = vshrl.u32 %v5640_v30, %v4494_v56 }
 0x158   : > { %v1675_v43 = vsel %vm1674_vm7, %v1673_v32, 0  ;;  %v1874_v34 = vand.u32 2139095040, %v4508_v24  ;;  %v4527_v31 = vadd.f32 %v4240_v19, %v954_v53  ;;  %v4532_v38 = vsel %vm1282_vm6, %v4503_v2, 920167782 }
 0x159   : > { %5726 = vst [vmem:[#allocation28_spill] sm:$0xff] %v4519_v63  ;;  %5727 = vst [vmem:[#allocation29_spill] sm:$0xff] %v4523_v20  ;;  %v1377_v26 = vshll.u32 %v5648_v16, %v4478_v3  ;;  %v4538_v55 = vshll.u32 %v5656_v27, %v4478_v3  ;;  %v4541_v51 = vsub.s32 32, %v4505_v48  ;;  %v1777_v13 = vadd.s32 1, %v2918_v25 }
 0x15a   : > { %5728 = vst [vmem:[#allocation30_spill] sm:$0xff] %v4532_v38  ;;  %v1875_v59 = vshrl.u32 %v1874_v34, 23  ;;  %v1978_v19 = vand.u32 2139095040, %v4527_v31  ;;  %v4545_v28 = vadd.f32 %v4224_v14, %v959_v54  ;;  %v4547_v32 = vadd.s32 4294967294, %v1107_v41 }
 0x15b   : > { %5729 = vst [vmem:[#allocation31_spill] sm:$0xff] %v4538_v55  ;;  %5730 = vst [vmem:[#allocation32_spill] sm:$0xff] %v4541_v51  ;;  %v4549_v17 = vshrl.u32 %v1363_v4, 5  ;;  %v4552_v45 = vsub.s32 32, %v4519_v63  ;;  %v4554_v23 = vand.u32 31, %v1675_v43  ;;  %v4557_v35 = vmin.u32 %v1209_v39, %v4491_v50 }
 0x15c   : > { %5731 = vst [vmem:[#allocation33_spill] sm:$0xff] %v4547_v32  ;;  %v4559_v53 = vor.u32 %v1378_v21, %v1377_v26  ;;  %v2922_v34 = vadd.s32 4294967169, %v1875_v59  ;;  %v4563_v14 = vshrl.u32 %v1467_v49, 5  ;;  %v1481_v4 = vshll.u32 %v5648_v16, %v4505_v48 }
 0x15d   : > { %5732 = vst [vmem:[#allocation34_spill] sm:$0xff] %v4549_v17  ;;  %5733 = vst [vmem:[#allocation35_spill] sm:$0xff] %v4552_v45  ;;  %v1482_v54 = vshrl.u32 %v5656_v27, %v4541_v51  ;;  %v4571_v41 = vshll.u32 %v5656_v27, %v4505_v48  ;;  %vm1778_vm8 = vcmp.gt.s32.totalorder %v1777_v13, 0  ;;  %v1979_v21 = vshrl.u32 %v1978_v19, 23 }
 0x15e   : > { %5734 = vst [vmem:[#allocation36_spill] sm:$0xff] %v4557_v35  ;;  %5735 = vst [vmem:[#allocation37_spill] sm:$0xff] %v4559_v53  ;;  %v1881_v39 = vadd.s32 1, %v2922_v34  ;;  %v2082_v26 = vand.u32 2139095040, %v4545_v28  ;;  %v4576_v59 = vshrl.u32 %v5640_v30, %v4541_v51  ;;  %v1586_v49 = vshrl.u32 %v5656_v27, %v4552_v45 }
 0x15f   : > { %5736 = vst [vmem:[#allocation38_spill] sm:$0xff] %v4563_v14  ;;  %5737 = vst [vmem:[#allocation39_spill] sm:$0xff] %v4571_v41  ;;  %v4582_v1 = vshrl.u32 %v5640_v30, %v4552_v45  ;;  %v4585_v46 = vsub.s32 32, %v4554_v23  ;;  %v2926_v47 = vadd.s32 4294967169, %v1979_v21  ;;  %v5652_v19 = vand.u32 2147483647, %v4545_v28 }
 0x160   : > { %5738 = vst [vmem:[#allocation40_spill] sm:$0xff] %v4576_v59  ;;  %vm1882_vm9 = vcmp.gt.s32.totalorder %v1881_v39, 0  ;;  %v2083_v34 = vshrl.u32 %v2082_v26, 23  ;;  %v4588_v37 = vshrl.u32 %v1571_v36, 5  ;;  %v1585_v25 = vshll.u32 %v5648_v16, %v4519_v63 }
 0x161   : > { %v1779_v12 = vsel %vm1778_vm8, %v1777_v13, 0  ;;  %v1883_v7 = vsel %vm1882_vm9, %v1881_v39, 0  ;;  %v4594_v5 = vshll.u32 %v5656_v27, %v4519_v63  ;;  %v1985_v58 = vadd.s32 1, %v2926_v47 }
 0x162   : > { %v4596_v30 = vand.u32 31, %v1883_v7  ;;  %v2930_v62 = vadd.s32 4294967169, %v2083_v34  ;;  %v4598_v33 = vor.u32 %v1482_v54, %v1481_v4  ;;  %v4602_v36 = vor.u32 %v1586_v49, %v1585_v25 }
 0x163   : > { %v1690_v26 = vshrl.u32 %v5656_v27, %v4585_v46  ;;  %v4608_v39 = vshrl.u32 %v1675_v43, 5  ;;  %v4610_v16 = vand.u32 31, %v1779_v12  ;;  %v2086_v47 = vand.u32 8388607, %v5652_v19 }
 0x164   : > { %5739 = vst [vmem:[#allocation41_spill] sm:$0xff] %v4598_v33  ;;  %v5740_v4 = vmov 2102212464   ;;  %v4617_v34 = vsub.s32 32, %v4596_v30  ;;  %vm1986_vm10 = vcmp.gt.s32.totalorder %v1985_v58, 0  ;;  %v2089_v25 = vadd.s32 1, %v2930_v62 }
 0x165   : > { %v1689_v54 = vshll.u32 %v5740_v4, %v4554_v23  ;;  %v4621_v49 = vshll.u32 %v5656_v27, %v4554_v23  ;;  %v5741_v43 = vmov 1326507024   ;;  %v1987_v13 = vsel %vm1986_vm10, %v1985_v58, 0 }
 0x166   : > { %v4625_v21 = vshrl.u32 %v5741_v43, %v4585_v46  ;;  %v4630_v40 = vshrl.u32 %v1779_v12, 5  ;;  %v4632_v50 = vand.u32 31, %v1987_v13  ;;  %vm2090_vm11 = vcmp.gt.s32.totalorder %v2089_v25, 0 }
 0x167   : > { %v4628_v19 = vor.u32 %v1690_v26, %v1689_v54  ;;  %v4635_v62 = vsub.s32 32, %v4610_v16  ;;  %v4637_v15 = vshrl.u32 %v1883_v7, 5  ;;  %v2091_v27 = vsel %vm2090_vm11, %v2089_v25, 0 }
 0x168   : > { %v2087_v9 = vor.u32 8388608, %v2086_v47  ;;  %v4641_v57 = vshll.u32 %v5740_v4, %v4596_v30  ;;  %v5742_v58 = vmov 920167782   ;;  %v1990_v54 = vsub.s32 32, %v4632_v50 }
 0x169   : > { %v4645_v26 = vshrl.u32 %v5742_v58, %v4617_v34  ;;  %v4649_v12 = vshll.u32 %v5742_v58, %v4596_v30  ;;  %v4652_v42 = vshrl.u32 %v1987_v13, 5  ;;  %v2092_v7 = vshrl.u32 %v2091_v27, 5 }
 0x16a   : > { %v2093_v61 = vand.u32 31, %v2091_v27  ;;  %v5743_v47 = vand.u32 2147483647, %v4527_v31  ;;  %v2001_v38 = vshll.u32 %v5740_v4, %v4632_v50  ;;  %v2002_v2 = vshrl.u32 %v5742_v58, %v1990_v54 }
 0x16b   : > { %v2004_v0 = vshll.u32 %v5742_v58, %v4632_v50  ;;  %v2005_v29 = vshrl.u32 %v5741_v43, %v1990_v54  ;;  %v4665_v22 = vshll.u32 %v2087_v9, 8  ;;  %v5744_v27 = vmov 683565275  }
 0x16c   : > { %v4656_v25 = vand.u32 8388607, %v5743_v47  ;;  %v2094_v6 = vsub.s32 32, %v2093_v61  ;;  %v2105_v13 = vshll.u32 %v5740_v4, %v2093_v61  ;;  %v1992_v10 = vshll.u32 %v5744_v27, %v4632_v50 }
 0x16d   : > { %v2003_v47 = vor.u32 %v2002_v2, %v2001_v38  ;;  %v2006_v44 = vor.u32 %v2005_v29, %v2004_v0  ;;  %v2108_v32 = vshll.u32 %v5742_v58, %v2093_v61  ;;  %vm2114_vm12 = vcmp.lt.s32.totalorder %v2092_v7, 4 }
 0x16e   : > { %vm2010_vm13 = vcmp.lt.s32.totalorder %v4652_v42, 4  ;;  %v2106_v3 = vshrl.u32 %v5742_v58, %v2094_v6  ;;  %v2109_v56 = vshrl.u32 %v5741_v43, %v2094_v6  ;;  %v2096_v55 = vshll.u32 %v5744_v27, %v2093_v61 }
 0x16f   : > { %v5745_v20 = vmov 2475754826   ;;  %v2095_v9 = vshrl.u32 %v5744_v27, %v2094_v6  ;;  %v5746_v17 = vmov 2131351028   ;;  %v2103_v48 = vshrl.u32 %v5740_v4, %v2094_v6 }
 0x170   : > { %v2097_v53 = vshrl.u32 %v5745_v20, %v2094_v6  ;;  %v2099_v8 = vshll.u32 %v5745_v20, %v2093_v61  ;;  %v2100_v2 = vshrl.u32 %v5746_v17, %v2094_v6  ;;  %v2102_v29 = vshll.u32 %v5746_v17, %v2093_v61 }
 0x171   : > { %v2107_v0 = vor.u32 %v2106_v3, %v2105_v13  ;;  %v2110_v38 = vor.u32 %v2109_v56, %v2108_v32  ;;  %vm2111_vm14 = vcmp.lt.s32.totalorder %v2092_v7, 1  ;;  %vm2112_vm15 = vcmp.lt.s32.totalorder %v2092_v7, 2 }
 0x172   : > { %v2098_v51 = vor.u32 %v2097_v53, %v2096_v55  ;;  %v2101_v52 = vor.u32 %v2100_v2, %v2099_v8  ;;  %vm2113_vm3 = vcmp.lt.s32.totalorder %v2092_v7, 3  ;;  %v2104_v33 = vor.u32 %v2103_v48, %v2102_v29 }
 0x173   : > { %v2120_v41 = vsel %vm2114_vm12, %v2107_v0, 920167782  ;;  %v2124_v59 = vsel %vm2114_vm12, %v2110_v38, 1326507024  ;;  %v1993_v45 = vshrl.u32 %v5745_v20, %v1990_v54  ;;  %v1995_v61 = vshll.u32 %v5745_v20, %v4632_v50 }
 0x174   : > { %v2115_v35 = vsel %vm2111_vm14, %v2095_v9, %v2098_v51  ;;  %v2119_v14 = vsel %vm2111_vm14, %v2098_v51, %v2101_v52  ;;  %v2125_v63 = vsel %vm2113_vm3, %v2107_v0, %v2124_v59  ;;  %v2116_v3 = vsel %vm2114_vm12, %v2104_v33, 2102212464 }
 0x175   : > { %v2121_v6 = vsel %vm2113_vm3, %v2104_v33, %v2120_v41  ;;  %v2123_v8 = vsel %vm2111_vm14, %v2101_v52, %v2104_v33  ;;  %v1996_v56 = vshrl.u32 %v5746_v17, %v1990_v54  ;;  %v2117_v55 = vsel %vm2113_vm3, %v2101_v52, %v2116_v3 }
 0x176   : > { %v2122_v32 = vsel %vm2112_vm15, %v2119_v14, %v2121_v6  ;;  %v2126_v53 = vsel %vm2112_vm15, %v2123_v8, %v2125_v63  ;;  %v1994_v48 = vor.u32 %v1993_v45, %v1992_v10  ;;  %v2118_v51 = vsel %vm2112_vm15, %v2115_v35, %v2117_v55 }
 0x177   : > { %v4691_v59 = vmul.u32.u64.low %v4665_v22, %v2126_v53  ;;  %v4692_v13 = vmul.u32.u64.high %v4665_v22, %v2126_v53, %v4691_v59  ;;  %v1997_v9 = vor.u32 %v1996_v56, %v1995_v61  ;;  %v2020_v2 = vsel %vm2010_vm13, %v2006_v44, 1326507024 }
 0x178   : > { %v4697_v33 = vmul.u32.u64.low %v4665_v22, %v2122_v32  ;;  %v4698_v41 = vmul.u32.u64.high %v4665_v22, %v2122_v32, %v4697_v33  ;;  %v1983_v52 = vor.u32 8388608, %v4656_v25  ;;  %v1901_v10 = vshrl.u32 %v5741_v43, %v4617_v34 }
 0x179   : > { %v1991_v63 = vshrl.u32 %v5744_v27, %v1990_v54  ;;  %v1998_v45 = vshll.u32 %v5746_v17, %v4632_v50  ;;  %v1999_v35 = vshrl.u32 %v5740_v4, %v1990_v54  ;;  %vm1906_vm4 = vcmp.lt.s32.totalorder %v4637_v15, 4 }
 0x17a   : > { %v2016_v44 = vsel %vm2010_vm13, %v2003_v47, 920167782  ;;  %v2134_v14 = vmul.u32 %v4665_v22, %v2118_v51  ;;  %vm2007_vm5 = vcmp.lt.s32.totalorder %v4652_v42, 1  ;;  %vm2009_vm7 = vcmp.lt.s32.totalorder %v4652_v42, 3 }
 0x17b   : > { %vm2136_vm8 = vc.u32 %v4692_v13, %v4697_v33  ;;  %v2000_v7 = vor.u32 %v1999_v35, %v1998_v45  ;;  %v2015_v25 = vsel %vm2007_vm5, %v1994_v48, %v1997_v9  ;;  %v2021_v29 = vsel %vm2009_vm7, %v2003_v47, %v2020_v2 }
 0x17c   : > { %v2137_v50 = vadd.s32 1, %v4698_v41  ;;  %vm2008_vm9 = vcmp.lt.s32.totalorder %v4652_v42, 2  ;;  %v2011_v54 = vsel %vm2007_vm5, %v1991_v63, %v1994_v48  ;;  %v2023_v0 = vshll.u32 %v1983_v52, 8 }
 0x17d   : > { %v2012_v38 = vsel %vm2010_vm13, %v2000_v7, 2102212464  ;;  %v2017_v22 = vsel %vm2009_vm7, %v2000_v7, %v2016_v44  ;;  %v2019_v61 = vsel %vm2007_vm5, %v1997_v9, %v2000_v7  ;;  %v1871_v3 = vand.u32 2147483647, %v4508_v24 }
 0x17e   : > { %v2138_v6 = vsel %vm2136_vm8, %v2137_v50, %v4698_v41  ;;  %v2013_v8 = vsel %vm2009_vm7, %v1997_v9, %v2012_v38  ;;  %v2018_v56 = vsel %vm2008_vm9, %v2015_v25, %v2017_v22  ;;  %v2022_v47 = vsel %vm2008_vm9, %v2019_v61, %v2021_v29 }
 0x17f   : > { %v1899_v55 = vor.u32 %v4645_v26, %v4641_v57  ;;  %v2139_v32 = vadd.s32 %v2138_v6, %v2134_v14  ;;  %v4728_v53 = vmul.u32.u64.low %v2023_v0, %v2022_v47  ;;  %v4729_v48 = vmul.u32.u64.high %v2023_v0, %v2022_v47, %v4728_v53 }
 0x180   : > { %v1902_v51 = vor.u32 %v1901_v10, %v4649_v12  ;;  %v4732_v59 = vmul.u32.u64.low %v2023_v0, %v2018_v56  ;;  %v4733_v2 = vmul.u32.u64.high %v2023_v0, %v2018_v56, %v4732_v59  ;;  %v1888_v9 = vshll.u32 %v5744_v27, %v4596_v30 }
 0x181   : > { %v2140_v41 = vadd.s32 536870912, %v2139_v32  ;;  %v2014_v52 = vsel %vm2008_vm9, %v2011_v54, %v2013_v8  ;;  %v1889_v57 = vshrl.u32 %v5745_v20, %v4617_v34  ;;  %v1892_v26 = vshrl.u32 %v5746_v17, %v4617_v34 }
 0x182   : > { %v1878_v12 = vand.u32 8388607, %v1871_v3  ;;  %v1891_v10 = vshll.u32 %v5745_v20, %v4596_v30  ;;  %v1894_v63 = vshll.u32 %v5746_v17, %v4596_v30  ;;  %v1895_v45 = vshrl.u32 %v5740_v4, %v4617_v34 }
 0x183   : > { %v1912_v42 = vsel %vm1906_vm4, %v1899_v55, 920167782  ;;  %v2141_v35 = vshrl.u32 %v2140_v41, 30  ;;  %vm2032_vm10 = vc.u32 %v4729_v48, %v4732_v59  ;;  %v1890_v44 = vor.u32 %v1889_v57, %v1888_v9 }
 0x184   : > { %v1916_v14 = vsel %vm1906_vm4, %v1902_v51, 1326507024  ;;  %v2033_v7 = vadd.s32 1, %v4733_v2  ;;  %v1893_v25 = vor.u32 %v1892_v26, %v1891_v10  ;;  %v1896_v29 = vor.u32 %v1895_v45, %v1894_v63 }
 0x185   : > { %v2142_v50 = vshll.u32 %v2141_v35, 30  ;;  %v2030_v30 = vmul.u32 %v2023_v0, %v2014_v52  ;;  %vm1903_vm11 = vcmp.lt.s32.totalorder %v4637_v15, 1  ;;  %vm1905_vm12 = vcmp.lt.s32.totalorder %v4637_v15, 3 }
 0x186   : > { %v2034_v54 = vsel %vm2032_vm10, %v2033_v7, %v4733_v2  ;;  %v1879_v38 = vor.u32 8388608, %v1878_v12  ;;  %v1911_v22 = vsel %vm1903_vm11, %v1890_v44, %v1893_v25  ;;  %v1913_v61 = vsel %vm1905_vm12, %v1896_v29, %v1912_v42 }
 0x187   : > { %v1794_v6 = vshrl.u32 %v5742_v58, %v4635_v62  ;;  %v4768_v8 = vsub.s32 %v2139_v32, %v2142_v50  ;;  %v2165_v56 = vsub.s32 4, %v2141_v35  ;;  %v2035_v0 = vadd.s32 %v2034_v54, %v2030_v30 }
 0x188   : > { %v1887_v47 = vshrl.u32 %v5744_v27, %v4617_v34  ;;  %vm1904_vm13 = vcmp.lt.s32.totalorder %v4637_v15, 2  ;;  %v1908_v53 = vsel %vm1906_vm4, %v1896_v29, 2102212464  ;;  %v1915_v51 = vsel %vm1903_vm11, %v1893_v25, %v1896_v29 }
 0x189   : > { %v2145_v2 = vsub.s32 0, %v4768_v8  ;;  %v2036_v9 = vadd.s32 536870912, %v2035_v0  ;;  %v1914_v32 = vsel %vm1904_vm13, %v1911_v22, %v1913_v61  ;;  %v1917_v41 = vsel %vm1905_vm12, %v1899_v55, %v1916_v14 }
 0x18a   : > { %vm2081_vm14 = vcmp.lt.s32.totalorder %v4545_v28, 0  ;;  %v1907_v34 = vsel %vm1903_vm11, %v1887_v47, %v1890_v44  ;;  %v1918_v52 = vsel %vm1904_vm13, %v1915_v51, %v1917_v41  ;;  %v1919_v57 = vshll.u32 %v1879_v38, 8 }
 0x18b   : > { %v2931_v26 = vmin.u32 %v2145_v2, %v4768_v8  ;;  %v2166_v12 = vsel %vm2081_vm14, %v2165_v56, %v2141_v35  ;;  %v4790_v10 = vshrl.u32 %v2036_v9, 30  ;;  %v1909_v63 = vsel %vm1905_vm12, %v1893_v25, %v1908_v53 }
 0x18c   : > { %v4794_v55 = vmul.u32.u64.low %v1919_v57, %v1918_v52  ;;  %v4795_v45 = vmul.u32.u64.high %v1919_v57, %v1918_v52, %v4794_v55  ;;  %v4797_v42 = vmul.u32.u64.low %v1919_v57, %v1914_v32  ;;  %v4798_v14 = vmul.u32.u64.high %v1919_v57, %v1914_v32, %v4797_v42 }
 0x18d   : > { %v1694_v44 = vor.u32 %v4625_v21, %v4621_v49  ;;  %vm1698_vm15 = vcmp.lt.s32.totalorder %v4608_v39, 4  ;;  %v1797_v35 = vshrl.u32 %v5741_v43, %v4635_v62  ;;  %v2147_v7 = vclz %v2931_v26 }
 0x18e   : > { %v1793_v29 = vshll.u32 %v5740_v4, %v4610_v16  ;;  %v1796_v25 = vshll.u32 %v5742_v58, %v4610_v16  ;;  %v5747_v50 = vand.u32 2147483647, %v4545_v28  ;;  %v2038_v21 = vshll.u32 %v4790_v10, 30 }
 0x18f   : > { %vm1802_vm4 = vcmp.lt.s32.totalorder %v4630_v40, 4  ;;  %v2932_v49 = vadd.s32 4294967294, %v2147_v7  ;;  %v1910_v54 = vsel %vm1904_vm13, %v1907_v34, %v1909_v63  ;;  %v4825_v58 = vsel %vm1698_vm15, %v4628_v19, 920167782 }
 0x190   : > { %vm4812_vm3 = vcmp.le.f32.partialorder %v5747_v50, 0.7853982  ;;  %v4827_v38 = vor.u32 %v1794_v6, %v1793_v29  ;;  %v4829_v22 = vsub.s32 %v2035_v0, %v2038_v21  ;;  %vm1928_vm5 = vc.u32 %v4795_v45, %v4797_v42 }
 0x191   : > { %v2168_v43 = vsel %vm4812_vm3, 0, %v2166_v12  ;;  %v4835_v61 = vsel %vm1698_vm15, %v1694_v44, 1326507024  ;;  %v1798_v56 = vor.u32 %v1797_v35, %v1796_v25  ;;  %vm2933_vm7 = vcmp.lt.s32.totalorder %v2932_v49, 0 }
 0x192   : > { %v1929_v15 = vadd.s32 1, %v4798_v14  ;;  %v2150_v47 = vsel %vm2933_vm7, 0, %v2932_v49  ;;  %v2172_v53 = vadd.s32 3, %v2168_v43  ;;  %v2041_v51 = vsub.s32 0, %v4829_v22 }
 0x193   : > { %v1926_v2 = vmul.u32 %v1919_v57, %v1910_v54  ;;  %v2135_v6 = vadd.s32 %v4697_v33, %v4692_v13  ;;  %v2151_v0 = vsub.s32 32, %v2150_v47  ;;  %v2155_v9 = vsub.s32 4294967266, %v2150_v47 }
 0x194   : > { %v1930_v32 = vsel %vm1928_vm5, %v1929_v15, %v4798_v14  ;;  %v1808_v41 = vsel %vm1802_vm4, %v4827_v38, 920167782  ;;  %v2927_v34 = vmin.u32 %v2041_v51, %v4829_v22  ;;  %v1767_v26 = vand.u32 2147483647, %v4466_v60 }
 0x195   : > { %v1931_v52 = vadd.s32 %v1930_v32, %v1926_v2  ;;  %v1812_v12 = vsel %vm1802_vm4, %v1798_v56, 1326507024  ;;  %v2152_v57 = vshll.u32 %v4768_v8, %v2150_v47  ;;  %v2153_v63 = vshrl.u32 %v2135_v6, %v2151_v0 }
 0x196   : > { %v2156_v13 = vadd.s32 127, %v2155_v9  ;;  %v4850_v33 = vand.u32 3, %v2172_v53  ;;  %vm1977_vm8 = vcmp.lt.s32.totalorder %v4527_v31, 0  ;;  %v2031_v55 = vadd.s32 %v4732_v59, %v4729_v48 }
 0x197   : > { %v2043_v14 = vclz %v2927_v34  ;;  %v2154_v44 = vor.u32 %v2153_v63, %v2152_v57  ;;  %v2061_v7 = vsub.s32 4, %v4790_v10  ;;  %v1932_v29 = vadd.s32 536870912, %v1931_v52 }
 0x198   : > { %v2157_v35 = vshll.u32 %v2156_v13, 23  ;;  %v1774_v50 = vand.u32 8388607, %v1767_v26  ;;  %v1783_v8 = vshrl.u32 %v5744_v27, %v4635_v62  ;;  %v1791_v21 = vshrl.u32 %v5740_v4, %v4635_v62 }
 0x199   : > { %v2928_v25 = vadd.s32 4294967294, %v2043_v14  ;;  %v4862_v43 = vshrl.u32 %v1932_v29, 30  ;;  %v1785_v48 = vshrl.u32 %v5745_v20, %v4635_v62  ;;  %v1788_v59 = vshrl.u32 %v5746_v17, %v4635_v62 }
 0x19a   : > { %v2158_v49 = vor.u32 4788187, %v2157_v35  ;;  %v1784_v54 = vshll.u32 %v5744_v27, %v4610_v16  ;;  %v1787_v56 = vshll.u32 %v5745_v20, %v4610_v16  ;;  %v1790_v15 = vshll.u32 %v5746_v17, %v4610_v16 }
 0x19b   : > { %vm2929_vm9 = vcmp.lt.s32.totalorder %v2928_v25, 0  ;;  %v2161_v53 = vcvt.s32.f32 %v2154_v44  ;;  %v1934_v2 = vshll.u32 %v4862_v43, 30  ;;  %v2062_v62 = vsel %vm1977_vm8, %v2061_v7, %v4790_v10 }
 0x19c   : > { %v2159_v47 = vand.u32 2147483647, %v2158_v49  ;;  %v2046_v51 = vsel %vm2929_vm9, 0, %v2928_v25  ;;  %v1792_v9 = vor.u32 %v1791_v21, %v1790_v15  ;;  %v5750_v34 = vand.u32 2147483647, %v4527_v31 }
 0x19d   : > { %v2047_v6 = vsub.s32 32, %v2046_v51  ;;  %v2051_v0 = vsub.s32 4294967266, %v2046_v51  ;;  %v4884_v16 = vsub.s32 %v1931_v52, %v1934_v2  ;;  %v1786_v63 = vor.u32 %v1785_v48, %v1784_v54 }
 0x19e   : > { %v2162_v32 = vmul.f32 %v2161_v53, %v2159_v47  ;;  %vm4880_vm10 = vcmp.le.f32.partialorder %v5750_v34, 0.7853982  ;;  %v1789_v13 = vor.u32 %v1788_v59, %v1787_v56  ;;  %v2048_v14 = vshll.u32 %v4829_v22, %v2046_v51 }
 0x19f   : > { %v2049_v44 = vshrl.u32 %v2031_v55, %v2047_v6  ;;  %v2052_v35 = vadd.s32 127, %v2051_v0  ;;  %v1775_v29 = vor.u32 8388608, %v1774_v50  ;;  %v1937_v10 = vsub.s32 0, %v4884_v16 }
 0x1a0   : > { %v2163_v25 = vxor.u32 2147483648, %v2162_v32  ;;  %vm1799_vm11 = vcmp.lt.s32.totalorder %v4630_v40, 1  ;;  %vm1800_vm12 = vcmp.lt.s32.totalorder %v4630_v40, 2  ;;  %vm1873_vm13 = vcmp.lt.s32.totalorder %v4508_v24, 0 }
 0x1a1   : > { %v2050_v7 = vor.u32 %v2049_v44, %v2048_v14  ;;  %v2053_v21 = vshll.u32 %v2052_v35, 23  ;;  %vm1801_vm5 = vcmp.lt.s32.totalorder %v4630_v40, 3  ;;  %v1804_v52 = vsel %vm1802_vm4, %v1792_v9, 2102212464 }
 0x1a2   : > { %v2164_v22 = vsel %vm2081_vm14, %v2163_v25, %v2162_v32  ;;  %v2923_v55 = vmin.u32 %v1937_v10, %v4884_v16  ;;  %v1807_v50 = vsel %vm1799_vm11, %v1786_v63, %v1789_v13  ;;  %v1811_v49 = vsel %vm1799_vm11, %v1789_v13, %v1792_v9 }
 0x1a3   : > { %v2167_v48 = vsel %vm4812_vm3, %v4545_v28, %v2164_v22  ;;  %v2054_v59 = vor.u32 4788187, %v2053_v21  ;;  %v1809_v54 = vsel %vm1801_vm5, %v1792_v9, %v1808_v41  ;;  %v1813_v56 = vsel %vm1801_vm5, %v4827_v38, %v1812_v12 }
 0x1a4   : > { %3463 = vcosq.f32 %v2167_v48  ;;  %v1939_v15 = vclz %v2923_v55  ;;  %v1803_v47 = vsel %vm1799_vm11, %v1783_v8, %v1786_v63  ;;  %v1805_v53 = vsel %vm1801_vm5, %v1789_v13, %v1804_v52 }
 0x1a5   : > { %3465 = vsinq.f32 %v2167_v48  ;;  %v2055_v51 = vand.u32 2147483647, %v2054_v59  ;;  %v2057_v2 = vcvt.s32.f32 %v2050_v7  ;;  %v1814_v6 = vsel %vm1800_vm12, %v1811_v49, %v1813_v56 }
 0x1a6   : > { %v2924_v0 = vadd.s32 4294967294, %v1939_v15  ;;  %v1957_v30 = vsub.s32 4, %v4862_v43  ;;  %v1810_v41 = vsel %vm1800_vm12, %v1807_v50, %v1809_v54  ;;  %v1815_v9 = vshll.u32 %v1775_v29, 8 }
 0x1a7   : > { %v2058_v38 = vmul.f32 %v2057_v2, %v2055_v51  ;;  %v2064_v12 = vsel %vm4880_vm10, 0, %v2062_v62  ;;  %v1927_v8 = vadd.s32 %v4797_v42, %v4795_v45  ;;  %v1806_v32 = vsel %vm1800_vm12, %v1803_v47, %v1805_v53 }
 0x1a8   : > { %vm4920_vm14 = vcmp.le.f32.partialorder %v1871_v3, 0.7853982  ;;  %vm2925_vm3 = vcmp.lt.s32.totalorder %v2924_v0, 0  ;;  %v4924_v63 = vmul.u32.u64.low %v1815_v9, %v1814_v6  ;;  %v4925_v13 = vmul.u32.u64.high %v1815_v9, %v1814_v6, %v4924_v63 }
 0x1a9   : > { %v1663_v14 = vand.u32 2147483647, %v4457_v18  ;;  %v2059_v44 = vxor.u32 2147483648, %v2058_v38  ;;  %v1942_v62 = vsel %vm2925_vm3, 0, %v2924_v0  ;;  %v2068_v40 = vadd.s32 3, %v2064_v12 }
 0x1aa   : > { %v4928_v35 = vmul.u32.u64.low %v1815_v9, %v1810_v41  ;;  %v4929_v29 = vmul.u32.u64.high %v1815_v9, %v1810_v41, %v4928_v35  ;;  %v1943_v45 = vsub.s32 32, %v1942_v62  ;;  %v1947_v42 = vsub.s32 4294967266, %v1942_v62 }
 0x1ab   : > { %v4935_v3 = vsel %vm1873_vm13, %v1957_v30, %v4862_v43  ;;  %v2060_v25 = vsel %vm1977_vm8, %v2059_v44, %v2058_v38  ;;  %v1944_v10 = vshll.u32 %v4884_v16, %v1942_v62  ;;  %v1822_v7 = vmul.u32 %v1815_v9, %v1806_v32 }
 0x1ac   : > { %v1680_v21 = vshll.u32 %v5744_v27, %v4554_v23  ;;  %vm2175_vm4 = vcmp.eq.s32.totalorder %v4850_v33, 0  ;;  %v2063_v52 = vsel %vm4880_vm10, %v4527_v31, %v2060_v25  ;;  %v1945_v22 = vshrl.u32 %v1927_v8, %v1943_v45 }
 0x1ad   : > { %v1948_v55 = vadd.s32 127, %v1947_v42  ;;  %v1670_v43 = vand.u32 8388607, %v1663_v14  ;;  %vm2174_vm7 = vcmp.lt.s32.totalorder %v4850_v33, 2  ;;  %vm2402_vm8 = vcmask 1043456  }
 0x1ae   : > { %3467 = vcosq.f32 %v2063_v52  ;;  %vm1824_vm9 = vc.u32 %v4925_v13, %v4928_v35  ;;  %v1825_v16 = vadd.s32 1, %v4929_v29  ;;  %v1681_v50 = vshrl.u32 %v5745_v20, %v4585_v46 }
 0x1af   : > { %vm2171_vm11 = vweird.f32 %v4545_v28  ;;  %3469 = vsinq.f32 %v2063_v52  ;;  %v1946_v57 = vor.u32 %v1945_v22, %v1944_v10  ;;  %v1949_v49 = vshll.u32 %v1948_v55, 23  ;;  %v2185_v52 = vld [vmem:[%s5621_s5 + $0x10] sm:$0xff]  ;;  %v2186_v28 = vld [vmem:[%s5621_s5 + $0x18] sm:$0xff] }
 0x1b0   : > { %v1683_v48 = vshll.u32 %v5745_v20, %v4554_v23  ;;  %v1826_v59 = vsel %vm1824_vm9, %v1825_v16, %v4929_v29  ;;  %v1684_v54 = vshrl.u32 %v5746_v17, %v4585_v46  ;;  %v1686_v56 = vshll.u32 %v5746_v17, %v4554_v23  ;;  %3313 = vmatprep.mubr.msk.f32.mxu1 %vm760_vm2, %v2185_v52 }
 0x1b1   : > { %v1687_v15 = vshrl.u32 %v5740_v4, %v4585_v46  ;;  %vm2178_vm10 = vcmp.eq.s32.totalorder %v4850_v33, 2  ;;  %v4965_v47 = vand.u32 3, %v2068_v40  ;;  %v1950_v53 = vor.u32 4788187, %v1949_v49  ;;  %v3464_v2 = vpop.eup %3463  ;;  %3314 = vmatmul.mubr.msk.f32.gmra.mxu1 %vm760_vm2, %v2186_v28 }
 0x1b2   : > { %v1827_v51 = vadd.s32 %v1826_v59, %v1822_v7  ;;  %v1960_v6 = vsel %vm4920_vm14, 0, %v4935_v3  ;;  %v1682_v0 = vor.u32 %v1681_v50, %v1680_v21  ;;  %v1685_v30 = vor.u32 %v1684_v54, %v1683_v48  ;;  %v3466_v9 = vpop.eup %3465  ;;  %v2189_v21 = vld [vmem:[%s5622_s6 + $0x10] sm:$0xff] }
 0x1b3   : > { %v1688_v41 = vor.u32 %v1687_v15, %v1686_v56  ;;  %v2179_v38 = vxor.u32 2147483648, %v3464_v2  ;;  %v1951_v23 = vand.u32 2147483647, %v1950_v53  ;;  %v1953_v12 = vcvt.s32.f32 %v1946_v57  ;;  %3275 = vmatprep.mubr.msk.f32.mxu0 %vm558_vm1, %v2189_v21 }
 0x1b4   : > { %v1828_v8 = vadd.s32 536870912, %v1827_v51  ;;  %v2176_v32 = vxor.u32 2147483648, %v3466_v9  ;;  %v1671_v63 = vor.u32 8388608, %v1670_v43  ;;  %v1679_v44 = vshrl.u32 %v5744_v27, %v4585_v46  ;;  %v2190_v43 = vld [vmem:[%s5622_s6 + $0x18] sm:$0xff] }
 0x1b5   : > { %vm1695_vm12 = vcmp.lt.s32.totalorder %v4608_v39, 1  ;;  %v2180_v62 = vsel %vm2178_vm10, %v2179_v38, %v3466_v9  ;;  %v1954_v29 = vmul.f32 %v1953_v12, %v1951_v23  ;;  %vm1697_vm5 = vcmp.lt.s32.totalorder %v4608_v39, 3  ;;  %3276 = vmatmul.mubr.msk.f32.gmra.mxu0 %vm558_vm1, %v2190_v43 }
 0x1b6   : > { %v4975_v40 = vshrl.u32 %v1828_v8, 30  ;;  %v2177_v45 = vsel %vm2175_vm4, %v3464_v2, %v2176_v32  ;;  %v1703_v42 = vsel %vm1695_vm12, %v1682_v0, %v1685_v30  ;;  %v1705_v46 = vsel %vm1697_vm5, %v1688_v41, %v4825_v58 }
 0x1b7   : > { %v1707_v3 = vsel %vm1695_vm12, %v1685_v30, %v1688_v41  ;;  %v2181_v25 = vsel %vm2174_vm7, %v2177_v45, %v2180_v62  ;;  %v1955_v10 = vxor.u32 2147483648, %v1954_v29  ;;  %vm1696_vm3 = vcmp.lt.s32.totalorder %v4608_v39, 2 }
 0x1b8   : > { %v1830_v7 = vshll.u32 %v4975_v40, 30  ;;  %v2182_v58 = vsel %vm2171_vm11, nan, %v2181_v25  ;;  %v1700_v33 = vsel %vm1698_vm15, %v1688_v41, 2102212464  ;;  %v1709_v22 = vsel %vm1697_vm5, %v4628_v19, %v4835_v61 }
 0x1b9   : > { %v1711_v55 = vshll.u32 %v1671_v63, 8  ;;  %3316 = vmatprep.subr.msk.mxu0 %vm2402_vm8, %v2182_v58  ;;  %v1956_v16 = vsel %vm1873_vm13, %v1955_v10, %v1954_v29  ;;  %v1706_v19 = vsel %vm1696_vm3, %v1703_v42, %v1705_v46  ;;  %v1710_v61 = vsel %vm1696_vm3, %v1707_v3, %v1709_v22  ;;  %v5756_v46 = vld [vmem:[#allocation35_spill] sm:$0xff] }
 0x1ba   : > { %v5016_v50 = vsub.s32 %v1827_v51, %v1830_v7  ;;  %3317 = vmatpush3.msk.msra.mxu0 %vm2402_vm8, %v2182_v58  ;;  %v1959_v57 = vsel %vm4920_vm14, %v4508_v24, %v1956_v16  ;;  %v1964_v49 = vadd.s32 3, %v1960_v6  ;;  %v1699_v15 = vsel %vm1695_vm12, %v1679_v44, %v1682_v0 }
 0x1bb   : > { %v5026_v48 = vmul.u32.u64.low %v1711_v55, %v1710_v61  ;;  %v5027_v59 = vmul.u32.u64.high %v1711_v55, %v1710_v61, %v5026_v48  ;;  %v3468_v54 = vpop.eup %3467  ;;  %3471 = vcosq.f32 %v1959_v57  ;;  %v1701_v53 = vsel %vm1697_vm5, %v1685_v30, %v1700_v33 }
 0x1bc   : > { %v1833_v56 = vsub.s32 0, %v5016_v50  ;;  %v3470_v34 = vpop.eup %3469  ;;  %v2075_v51 = vxor.u32 2147483648, %v3468_v54  ;;  %3473 = vsinq.f32 %v1959_v57  ;;  %vm2070_vm2 = vcmp.lt.s32.totalorder %v4965_v47, 2 }
 0x1bd   : > { %v5036_v2 = vmul.u32.u64.low %v1711_v55, %v1706_v19  ;;  %v5037_v6 = vmul.u32.u64.high %v1711_v55, %v1706_v19, %v5036_v2  ;;  %v2072_v41 = vxor.u32 2147483648, %v3470_v34  ;;  %vm2074_vm15 = vcmp.eq.s32.totalorder %v4965_v47, 2 }
 0x1be   : > { %v2919_v9 = vmin.u32 %v1833_v56, %v5016_v50  ;;  %vm2071_vm13 = vcmp.eq.s32.totalorder %v4965_v47, 0  ;;  %v2076_v0 = vsel %vm2074_vm15, %v2075_v51, %v3470_v34  ;;  %v5044_v30 = vand.u32 3, %v1964_v49 }
 0x1bf   : > { %v1702_v38 = vsel %vm1696_vm3, %v1699_v15, %v1701_v53  ;;  %v2073_v23 = vsel %vm2071_vm13, %v3468_v54, %v2072_v41  ;;  %vm1720_vm1 = vc.u32 %v5027_v59, %v5036_v2  ;;  %v1559_v8 = vand.u32 2147483647, %v4449_v11 }
 0x1c0   : > { %v1835_v12 = vclz %v2919_v9  ;;  %vm1594_vm14 = vcmp.lt.s32.totalorder %v4588_v37, 4  ;;  %vm2067_vm4 = vweird.f32 %v4527_v31  ;;  %v2077_v32 = vsel %vm2070_vm2, %v2073_v23, %v2076_v0 }
 0x1c1   : > { %v1721_v47 = vadd.s32 1, %v5037_v6  ;;  %v1600_v63 = vsel %vm1594_vm14, %v4602_v36, 920167782  ;;  %v2078_v39 = vsel %vm2067_vm4, nan, %v2077_v32  ;;  %v1718_v62 = vmul.u32 %v1711_v55, %v1702_v38 }
 0x1c2   : > { %v2920_v44 = vadd.s32 4294967294, %v1835_v12  ;;  %v5755_v29 = vor.u32 %v4582_v1, %v4594_v5  ;;  %3318 = vmatprep.subr.mxu0 %v2078_v39  ;;  %v1823_v31 = vadd.s32 %v4928_v35, %v4925_v13  ;;  %v1577_v3 = vshrl.u32 %v5745_v20, %v5756_v46  ;;  %v5757_v13 = vld [vmem:[#allocation28_spill] sm:$0xff] }
 0x1c3   : > { %v1722_v42 = vsel %vm1720_vm1, %v1721_v47, %v5037_v6  ;;  %3319 = vmatpush3.msra.mxu0 %v2078_v39  ;;  %vm1967_vm7 = vcmp.eq.s32.totalorder %v5044_v30, 0  ;;  %v1566_v1 = vand.u32 8388607, %v1559_v8  ;;  %v1580_v5 = vshrl.u32 %v5746_v17, %v5756_v46 }
 0x1c4   : > { %v1604_v45 = vsel %vm1594_vm14, %v5755_v29, 1326507024  ;;  %vm2921_vm8 = vcmp.lt.s32.totalorder %v2920_v44, 0  ;;  %v1723_v25 = vadd.s32 %v1722_v42, %v1718_v62  ;;  %vm1966_vm9 = vcmp.lt.s32.totalorder %v5044_v30, 2 }
 0x1c5   : > { %v1838_v10 = vsel %vm2921_vm8, 0, %v2920_v44  ;;  %v1576_v35 = vshll.u32 %v5744_v27, %v5757_v13  ;;  %v1579_v7 = vshll.u32 %v5745_v20, %v5757_v13  ;;  %v1583_v21 = vshrl.u32 %v5740_v4, %v5756_v46 }
 0x1c6   : > { %vm1963_vm11 = vweird.f32 %v4508_v24  ;;  %v1839_v52 = vsub.s32 32, %v1838_v10  ;;  %v1843_v58 = vsub.s32 4294967266, %v1838_v10  ;;  %v1724_v33 = vadd.s32 536870912, %v1723_v25  ;;  %v5758_v24 = vld [vmem:[#allocation38_spill] sm:$0xff] }
 0x1c7   : > { %v1582_v22 = vshll.u32 %v5746_v17, %v5757_v13  ;;  %vm1970_vm10 = vcmp.eq.s32.totalorder %v5044_v30, 2  ;;  %v1840_v55 = vshll.u32 %v5016_v50, %v1838_v10  ;;  %v1578_v43 = vor.u32 %v1577_v3, %v1576_v35 }
 0x1c8   : > { %v1581_v28 = vor.u32 %v1580_v5, %v1579_v7  ;;  %vm1769_vm12 = vcmp.lt.s32.totalorder %v4466_v60, 0  ;;  %v1841_v16 = vshrl.u32 %v1823_v31, %v1839_v52  ;;  %v1844_v19 = vadd.s32 127, %v1843_v58  ;;  %v3472_v49 = vpop.eup %3471  ;;  %v5759_v52 = vld [vmem:[#allocation36_spill] sm:$0xff] }
 0x1c9   : > { %v5085_v61 = vshrl.u32 %v1724_v33, 30  ;;  %v1584_v57 = vor.u32 %v1583_v21, %v1582_v22  ;;  %v1853_v48 = vsub.s32 4, %v4975_v40  ;;  %v1567_v54 = vor.u32 8388608, %v1566_v1  ;;  %v3474_v15 = vpop.eup %3473  ;;  %v5760_v33 = vld [vmem:[#allocation41_spill] sm:$0xff] }
 0x1ca   : > { %v1575_v56 = vshrl.u32 %v5744_v27, %v5756_v46  ;;  %vm1591_vm5 = vcmp.lt.s32.totalorder %v4588_v37, 1  ;;  %v1971_v50 = vxor.u32 2147483648, %v3472_v49  ;;  %v1842_v53 = vor.u32 %v1841_v16, %v1840_v55  ;;  %v5761_v55 = vld [vmem:[#allocation40_spill] sm:$0xff] }
 0x1cb   : > { %v1845_v34 = vshll.u32 %v1844_v19, 23  ;;  %v1726_v51 = vshll.u32 %v5085_v61, 30  ;;  %v1968_v6 = vxor.u32 2147483648, %v3474_v15  ;;  %vm1592_vm3 = vcmp.lt.s32.totalorder %v4588_v37, 2 }
 0x1cc   : > { %vm1593_vm2 = vcmp.lt.s32.totalorder %v4588_v37, 3  ;;  %v1599_v41 = vsel %vm1591_vm5, %v1578_v43, %v1581_v28  ;;  %v1972_v9 = vsel %vm1970_vm10, %v1971_v50, %v3474_v15  ;;  %v1595_v32 = vsel %vm1591_vm5, %v1575_v56, %v1578_v43  ;;  %v5762_v43 = vld [vmem:[#allocation39_spill] sm:$0xff] }
 0x1cd   : > { %v1846_v0 = vor.u32 4788187, %v1845_v34  ;;  %v5098_v38 = vsub.s32 %v1723_v25, %v1726_v51  ;;  %v1601_v23 = vsel %vm1593_vm2, %v1584_v57, %v1600_v63  ;;  %v1969_v12 = vsel %vm1967_vm7, %v3472_v49, %v1968_v6  ;;  %v5767_v34 = vld [vmem:[#allocation27_spill] sm:$0xff]  ;;  %v5768_v6 = vld [vmem:[#allocation32_spill] sm:$0xff] }
 0x1ce   : > { %v1596_v47 = vsel %vm1594_vm14, %v1584_v57, 2102212464  ;;  %v1603_v39 = vsel %vm1591_vm5, %v1581_v28, %v1584_v57  ;;  %v1973_v44 = vsel %vm1966_vm9, %v1969_v12, %v1972_v9  ;;  %v1849_v29 = vcvt.s32.f32 %v1842_v53 }
 0x1cf   : > { %v1847_v62 = vand.u32 2147483647, %v1846_v0  ;;  %v1729_v31 = vsub.s32 0, %v5098_v38  ;;  %v1974_v63 = vsel %vm1963_vm11, nan, %v1973_v44  ;;  %v1602_v42 = vsel %vm1592_vm3, %v1599_v41, %v1601_v23 }
 0x1d0   : > { %v1605_v46 = vsel %vm1593_vm2, %v4602_v36, %v1604_v45  ;;  %v1607_v3 = vshll.u32 %v1567_v54, 8  ;;  %3320 = vmatprep.subr.mxu0 %v1974_v63  ;;  %v1597_v1 = vsel %vm1593_vm2, %v1581_v28, %v1596_v47  ;;  %vm1490_vm15 = vcmp.lt.s32.totalorder %v5758_v24, 4 }
 0x1d1   : > { %v1850_v25 = vmul.f32 %v1849_v29, %v1847_v62  ;;  %v2915_v30 = vmin.u32 %v1729_v31, %v5098_v38  ;;  %v1606_v5 = vsel %vm1592_vm3, %v1603_v39, %v1605_v46  ;;  %3321 = vmatpush3.msra.mxu0 %v1974_v63  ;;  %v1854_v10 = vsel %vm1769_vm12, %v1853_v48, %v4975_v40  ;;  %v5766_v48 = vld [vmem:[#allocation14_spill] sm:$0xff] }
 0x1d2   : > { %v5129_v13 = vmul.u32.u64.low %v1607_v3, %v1606_v5  ;;  %v5130_v36 = vmul.u32.u64.high %v1607_v3, %v1606_v5, %v5129_v13  ;;  %v5132_v7 = vmul.u32.u64.low %v1607_v3, %v1602_v42  ;;  %v5133_v21 = vmul.u32.u64.high %v1607_v3, %v1602_v42, %v5132_v7 }
 0x1d3   : > { %v1851_v45 = vxor.u32 2147483648, %v1850_v25  ;;  %v1731_v35 = vclz %v2915_v30  ;;  %v1211_v58 = vclz %v5759_v52  ;;  %v1496_v22 = vsel %vm1490_vm15, %v5760_v33, 920167782 }
 0x1d4   : > { %v5763_v28 = vor.u32 %v5761_v55, %v5762_v43  ;;  %v1598_v16 = vsel %vm1592_vm3, %v1595_v32, %v1597_v1  ;;  %vm5149_vm13 = vcmp.le.f32.partialorder %v1767_v26, 0.7853982  ;;  %v1455_v54 = vand.u32 2147483647, %v5766_v48 }
 0x1d5   : > { %v1852_v57 = vsel %vm1769_vm12, %v1851_v45, %v1850_v25  ;;  %v2916_v49 = vadd.s32 4294967294, %v1731_v35  ;;  %v1856_v37 = vsel %vm5149_vm13, 0, %v1854_v10  ;;  %vm1665_vm1 = vcmp.lt.s32.totalorder %v4457_v18, 0 }
 0x1d6   : > { %v1500_v40 = vsel %vm1490_vm15, %v5763_v28, 1326507024  ;;  %v1855_v56 = vsel %vm5149_vm13, %v4466_v60, %v1852_v57  ;;  %v1719_v26 = vadd.s32 %v5036_v2, %v5027_v59  ;;  %vm1616_vm14 = vc.u32 %v5130_v36, %v5132_v7  ;;  %v5771_v57 = vld [vmem:[#allocation34_spill] sm:$0xff] }
 0x1d7   : > { %3475 = vcosq.f32 %v1855_v56  ;;  %vm2917_vm4 = vcmp.lt.s32.totalorder %v2916_v49, 0  ;;  %v1614_v15 = vmul.u32 %v1607_v3, %v1598_v16  ;;  %v1617_v50 = vadd.s32 1, %v5133_v21 }
 0x1d8   : > { %3477 = vsinq.f32 %v1855_v56  ;;  %v1734_v53 = vsel %vm2917_vm4, 0, %v2916_v49  ;;  %v1472_v51 = vshll.u32 %v5744_v27, %v5767_v34  ;;  %v1473_v41 = vshrl.u32 %v5745_v20, %v5768_v6 }
 0x1d9   : > { %v1735_v9 = vsub.s32 32, %v1734_v53  ;;  %v1739_v0 = vsub.s32 4294967266, %v1734_v53  ;;  %v1618_v59 = vsel %vm1616_vm14, %v1617_v50, %v5133_v21  ;;  %v1462_v2 = vand.u32 8388607, %v1455_v54 }
 0x1da   : > { %v1736_v23 = vshll.u32 %v5098_v38, %v1734_v53  ;;  %v1749_v12 = vsub.s32 4, %v5085_v61  ;;  %v1619_v32 = vadd.s32 %v1618_v59, %v1614_v15  ;;  %v1474_v47 = vor.u32 %v1473_v41, %v1472_v51 }
 0x1db   : > { %vm5178_vm7 = vcmp.le.f32.partialorder %v1663_v14, 0.7853982  ;;  %v1737_v44 = vshrl.u32 %v1719_v26, %v1735_v9  ;;  %v1740_v62 = vadd.s32 127, %v1739_v0  ;;  %v1475_v29 = vshll.u32 %v5745_v20, %v5767_v34 }
 0x1dc   : > { %v1476_v31 = vshrl.u32 %v5746_v17, %v5768_v6  ;;  %v1860_v63 = vadd.s32 3, %v1856_v37  ;;  %v1620_v38 = vadd.s32 536870912, %v1619_v32  ;;  %v1478_v42 = vshll.u32 %v5746_v17, %v5767_v34 }
 0x1dd   : > { %v1479_v46 = vshrl.u32 %v5740_v4, %v5768_v6  ;;  %v1738_v14 = vor.u32 %v1737_v44, %v1736_v23  ;;  %v1741_v3 = vshll.u32 %v1740_v62, 23  ;;  %v1463_v25 = vor.u32 8388608, %v1462_v2 }
 0x1de   : > { %v1477_v30 = vor.u32 %v1476_v31, %v1475_v29  ;;  %v5190_v1 = vshrl.u32 %v1620_v38, 30  ;;  %vm1487_vm8 = vcmp.lt.s32.totalorder %v5758_v24, 1  ;;  %vm1489_vm9 = vcmp.lt.s32.totalorder %v5758_v24, 3 }
 0x1df   : > { %v1480_v5 = vor.u32 %v1479_v46, %v1478_v42  ;;  %v1742_v10 = vor.u32 4788187, %v1741_v3  ;;  %v1750_v13 = vsel %vm1665_vm1, %v1749_v12, %v5085_v61  ;;  %v1501_v35 = vsel %vm1489_vm9, %v5760_v33, %v1500_v40  ;;  %v5772_v42 = vld [vmem:[#allocation11_spill] sm:$0xff] }
 0x1e0   : > { %v1495_v45 = vsel %vm1487_vm8, %v1474_v47, %v1477_v30  ;;  %v1745_v21 = vcvt.s32.f32 %v1738_v14  ;;  %v1622_v55 = vshll.u32 %v5190_v1, 30  ;;  %vm1488_vm11 = vcmp.lt.s32.totalorder %v5758_v24, 2  ;;  %v5773_v24 = vld [vmem:[#allocation37_spill] sm:$0xff] }
 0x1e1   : > { %v1497_v43 = vsel %vm1489_vm9, %v1480_v5, %v1496_v22  ;;  %vm1859_vm10 = vweird.f32 %v4466_v60  ;;  %v1743_v28 = vand.u32 2147483647, %v1742_v10  ;;  %v1499_v16 = vsel %vm1487_vm8, %v1477_v30, %v1480_v5  ;;  %v5775_v10 = vld [vmem:[#allocation31_spill] sm:$0xff] }
 0x1e2   : > { %v1498_v61 = vsel %vm1488_vm11, %v1495_v45, %v1497_v43  ;;  %v1503_v19 = vshll.u32 %v1463_v25, 8  ;;  %vm1386_vm12 = vcmp.lt.s32.totalorder %v5771_v57, 4  ;;  %v1861_v33 = vand.u32 3, %v1860_v63 }
 0x1e3   : > { %v5212_v40 = vsub.s32 %v1619_v32, %v1622_v55  ;;  %v1492_v49 = vsel %vm1490_vm15, %v1480_v5, 2102212464  ;;  %v1502_v22 = vsel %vm1488_vm11, %v1499_v16, %v1501_v35  ;;  %v1746_v56 = vmul.f32 %v1745_v21, %v1743_v28  ;;  %v5774_v5 = vld [vmem:[#allocation29_spill] sm:$0xff] }
 0x1e4   : > { %v1471_v37 = vshrl.u32 %v5744_v27, %v5768_v6  ;;  %v5220_v26 = vmul.u32.u64.low %v1503_v19, %v1502_v22  ;;  %v5221_v15 = vmul.u32.u64.high %v1503_v19, %v1502_v22, %v5220_v26  ;;  %v3476_v50 = vpop.eup %3475  ;;  %v1752_v53 = vsel %vm5178_vm7, 0, %v1750_v13 }
 0x1e5   : > { %v1625_v34 = vsub.s32 0, %v5212_v40  ;;  %v5226_v51 = vmul.u32.u64.low %v1503_v19, %v1498_v61  ;;  %v5227_v41 = vmul.u32.u64.high %v1503_v19, %v1498_v61, %v5226_v51  ;;  %v3478_v9 = vpop.eup %3477  ;;  %v1867_v0 = vxor.u32 2147483648, %v3476_v50 }
 0x1e6   : > { %v1747_v59 = vxor.u32 2147483648, %v1746_v56  ;;  %v1491_v2 = vsel %vm1487_vm8, %v1471_v37, %v1474_v47  ;;  %v1493_v6 = vsel %vm1489_vm9, %v1477_v30, %v1492_v49  ;;  %vm1862_vm5 = vcmp.lt.s32.totalorder %v1861_v33, 2 }
 0x1e7   : > { %v1864_v23 = vxor.u32 2147483648, %v3478_v9  ;;  %vm1866_vm3 = vcmp.eq.s32.totalorder %v1861_v33, 2  ;;  %v2911_v12 = vmin.u32 %v1625_v34, %v5212_v40  ;;  %vm1863_vm2 = vcmp.eq.s32.totalorder %v1861_v33, 0 }
 0x1e8   : > { %v1868_v32 = vsel %vm1866_vm3, %v1867_v0, %v3478_v9  ;;  %v1748_v44 = vsel %vm1665_vm1, %v1747_v59, %v1746_v56  ;;  %v1756_v62 = vadd.s32 3, %v1752_v53  ;;  %v1494_v63 = vsel %vm1488_vm11, %v1491_v2, %v1493_v6 }
 0x1e9   : > { %v1865_v29 = vsel %vm1863_vm2, %v3476_v50, %v1864_v23  ;;  %v1751_v31 = vsel %vm5178_vm7, %v4457_v18, %v1748_v44  ;;  %v1627_v47 = vclz %v2911_v12  ;;  %vm1512_vm15 = vc.u32 %v5221_v15, %v5226_v51 }
 0x1ea   : > { %v1869_v38 = vsel %vm1862_vm5, %v1865_v29, %v1868_v32  ;;  %3479 = vcosq.f32 %v1751_v31  ;;  %v1351_v46 = vand.u32 2147483647, %v5772_v42  ;;  %v1513_v25 = vadd.s32 1, %v5227_v41 }
 0x1eb   : > { %v1870_v14 = vsel %vm1859_vm10, nan, %v1869_v38  ;;  %3481 = vsinq.f32 %v1751_v31  ;;  %v2912_v3 = vadd.s32 4294967294, %v1627_v47  ;;  %v5250_v39 = vadd.s32 4294967294, %v1211_v58  ;;  %v5777_v58 = vld [vmem:[#allocation24_spill] sm:$0xff] }
 0x1ec   : > { %v1392_v30 = vsel %vm1386_vm12, %v5773_v24, 920167782  ;;  %v5776_v13 = vor.u32 %v5774_v5, %v5775_v10  ;;  %3322 = vmatprep.subr.mxu0 %v1870_v14  ;;  %v1510_v60 = vmul.u32 %v1503_v19, %v1494_v63  ;;  %v5260_v35 = vand.u32 3, %v1756_v62  ;;  %v5778_v19 = vld [vmem:[#allocation20_spill] sm:$0xff] }
 0x1ed   : > { %3323 = vmatpush3.msra.mxu0 %v1870_v14  ;;  %vm2913_vm13 = vcmp.lt.s32.totalorder %v2912_v3, 0  ;;  %v1514_v52 = vsel %vm1512_vm15, %v1513_v25, %v5227_v41  ;;  %v1369_v21 = vshrl.u32 %v5745_v20, %v5777_v58  ;;  %v1615_v55 = vadd.s32 %v5132_v7, %v5130_v36 }
 0x1ee   : > { %v1396_v45 = vsel %vm1386_vm12, %v5776_v13, 1326507024  ;;  %v1630_v43 = vsel %vm2913_vm13, 0, %v2912_v3  ;;  %v1515_v28 = vadd.s32 %v1514_v52, %v1510_v60  ;;  %v1358_v61 = vand.u32 8388607, %v1351_v46 }
 0x1ef   : > { %v1631_v16 = vsub.s32 32, %v1630_v43  ;;  %v1635_v33 = vsub.s32 4294967266, %v1630_v43  ;;  %v1368_v49 = vshll.u32 %v5744_v27, %v5778_v19  ;;  %v1371_v22 = vshll.u32 %v5745_v20, %v5778_v19 }
 0x1f0   : > { %v1516_v56 = vadd.s32 536870912, %v1515_v28  ;;  %v1372_v37 = vshrl.u32 %v5746_v17, %v5777_v58  ;;  %v1374_v36 = vshll.u32 %v5746_v17, %v5778_v19  ;;  %v1375_v7 = vshrl.u32 %v5740_v4, %v5777_v58 }
 0x1f1   : > { %v1632_v26 = vshll.u32 %v5212_v40, %v1630_v43  ;;  %v1633_v50 = vshrl.u32 %v1615_v55, %v1631_v16  ;;  %v1636_v53 = vadd.s32 127, %v1635_v33  ;;  %v1370_v34 = vor.u32 %v1369_v21, %v1368_v49 }
 0x1f2   : > { %vm1759_vm1 = vcmp.eq.s32.totalorder %v5260_v35, 0  ;;  %v5281_v41 = vshrl.u32 %v1516_v56, 30  ;;  %v1373_v9 = vor.u32 %v1372_v37, %v1371_v22  ;;  %v1376_v0 = vor.u32 %v1375_v7, %v1374_v36 }
 0x1f3   : > { %vm1758_vm14 = vcmp.lt.s32.totalorder %v5260_v35, 2  ;;  %vm1762_vm4 = vcmp.eq.s32.totalorder %v5260_v35, 2  ;;  %v1634_v59 = vor.u32 %v1633_v50, %v1632_v26  ;;  %v1637_v2 = vshll.u32 %v1636_v53, 23  ;;  %v5781_v35 = vld [vmem:[#allocation33_spill] sm:$0xff]  ;;  %v5782_v53 = vld [vmem:[#allocation22_spill] sm:$0xff] }
 0x1f4   : > { %v1359_v6 = vor.u32 8388608, %v1358_v61  ;;  %vm1755_vm7 = vweird.f32 %v4457_v18  ;;  %v1645_v40 = vsub.s32 4, %v5190_v1  ;;  %v1518_v23 = vshll.u32 %v5281_v41, 30  ;;  %v5783_v18 = vld [vmem:[#allocation25_spill] sm:$0xff] }
 0x1f5   : > { %vm1383_vm8 = vcmp.lt.s32.totalorder %v5771_v57, 1  ;;  %vm1385_vm9 = vcmp.lt.s32.totalorder %v5771_v57, 3  ;;  %v1638_v12 = vor.u32 4788187, %v1637_v2  ;;  %v1367_v31 = vshrl.u32 %v5744_v27, %v5777_v58 }
 0x1f6   : > { %v1391_v32 = vsel %vm1383_vm8, %v1370_v34, %v1373_v9  ;;  %v1393_v44 = vsel %vm1385_vm9, %v1376_v0, %v1392_v30  ;;  %v1397_v62 = vsel %vm1385_vm9, %v5773_v24, %v1396_v45  ;;  %v5297_v29 = vsub.s32 %v1515_v28, %v1518_v23 }
 0x1f7   : > { %vm1384_vm11 = vcmp.lt.s32.totalorder %v5771_v57, 2  ;;  %v1388_v47 = vsel %vm1386_vm12, %v1376_v0, 2102212464  ;;  %v3480_v63 = vpop.eup %3479  ;;  %v1639_v38 = vand.u32 2147483647, %v1638_v12  ;;  %v1641_v14 = vcvt.s32.f32 %v1634_v59 }
 0x1f8   : > { %v1395_v3 = vsel %vm1383_vm8, %v1373_v9, %v1376_v0  ;;  %v1399_v25 = vshll.u32 %v1359_v6, 8  ;;  %v3482_v30 = vpop.eup %3481  ;;  %v1763_v5 = vxor.u32 2147483648, %v3480_v63  ;;  %v1521_v24 = vsub.s32 0, %v5297_v29  ;;  %v5786_v0 = vld [vmem:[#allocation8_spill] sm:$0xff] }
 0x1f9   : > { %v1394_v10 = vsel %vm1384_vm11, %v1391_v32, %v1393_v44  ;;  %v1398_v13 = vsel %vm1384_vm11, %v1395_v3, %v1397_v62  ;;  %v1760_v45 = vxor.u32 2147483648, %v3482_v30  ;;  %v1642_v60 = vmul.f32 %v1641_v14, %v1639_v38  ;;  %v5787_v38 = vld [vmem:[#allocation16_spill] sm:$0xff]  ;;  %v5788_v3 = vld [vmem:[#allocation19_spill] sm:$0xff] }
 0x1fa   : > { %v5311_v52 = vmul.u32.u64.low %v1399_v25, %v1398_v13  ;;  %v5312_v58 = vmul.u32.u64.high %v1399_v25, %v1398_v13, %v5311_v52  ;;  %v1764_v21 = vsel %vm1762_vm4, %v1763_v5, %v3482_v30  ;;  %v2907_v55 = vmin.u32 %v1521_v24, %v5297_v29 }
 0x1fb   : > { %v1387_v43 = vsel %vm1383_vm8, %v1367_v31, %v1370_v34  ;;  %v1389_v28 = vsel %vm1385_vm9, %v1373_v9, %v1388_v47  ;;  %v1761_v61 = vsel %vm1759_vm1, %v3480_v63, %v1760_v45  ;;  %v1643_v16 = vxor.u32 2147483648, %v1642_v60  ;;  %v5785_v9 = vld [vmem:[#allocation21_spill] sm:$0xff] }
 0x1fc   : > { %v5323_v33 = vmul.u32.u64.low %v1399_v25, %v1394_v10  ;;  %v5324_v19 = vmul.u32.u64.high %v1399_v25, %v1394_v10, %v5323_v33  ;;  %v1765_v49 = vsel %vm1758_vm14, %v1761_v61, %v1764_v21  ;;  %vm5331_vm10 = vcmp.le.f32.partialorder %v1559_v8, 0.7853982 }
 0x1fd   : > { %vm1561_vm12 = vcmp.lt.s32.totalorder %v4449_v11, 0  ;;  %v1523_v56 = vclz %v2907_v55  ;;  %v1766_v37 = vsel %vm1755_vm7, nan, %v1765_v49  ;;  %v1390_v26 = vsel %vm1384_vm11, %v1387_v43, %v1389_v28  ;;  %v5794_v49 = vld [vmem:[#allocation12_spill] sm:$0xff] }
 0x1fe   : > { %v1644_v36 = vsel %vm1561_vm12, %v1643_v16, %v1642_v60  ;;  %v1646_v7 = vsel %vm1561_vm12, %v1645_v40, %v5190_v1  ;;  %vm2893_vm5 = vcmp.lt.s32.totalorder %v5781_v35, 0  ;;  %3324 = vmatprep.subr.mxu0 %v1766_v37  ;;  %vm1408_vm3 = vc.u32 %v5312_v58, %v5323_v33  ;;  %v5789_v16 = vld [vmem:[#allocation26_spill] sm:$0xff] }
 0x1ff   : > { %v1647_v8 = vsel %vm5331_vm10, %v4449_v11, %v1644_v36  ;;  %v2908_v50 = vadd.s32 4294967294, %v1523_v56  ;;  %v5784_v34 = vor.u32 %v5782_v53, %v5783_v18  ;;  %3325 = vmatpush3.msra.mxu0 %v1766_v37  ;;  %v1409_v57 = vadd.s32 1, %v5324_v19  ;;  %v5792_v18 = vld [vmem:[#allocation30_spill] sm:$0xff] }
 0x200   : > { %3483 = vcosq.f32 %v1647_v8  ;;  %v1247_v59 = vand.u32 2147483647, %v5786_v0  ;;  %v1648_v2 = vsel %vm5331_vm10, 0, %v1646_v7  ;;  %v1406_v6 = vmul.u32 %v1399_v25, %v1390_v26 }
 0x201   : > { %v1292_v1 = vsel %vm1282_vm6, %v5784_v34, 1326507024  ;;  %3485 = vsinq.f32 %v1647_v8  ;;  %vm2909_vm2 = vcmp.lt.s32.totalorder %v2908_v50, 0  ;;  %v5357_v40 = vsel %vm2893_vm5, 0, %v5781_v35 }
 0x202   : > { %vm2897_vm15 = vcmp.lt.s32.totalorder %v5250_v39, 0  ;;  %v1526_v23 = vsel %vm2909_vm2, 0, %v2908_v50  ;;  %v1410_v12 = vsel %vm1408_vm3, %v1409_v57, %v5324_v19  ;;  %v1511_v32 = vadd.s32 %v5226_v51, %v5221_v15 }
 0x203   : > { %v1527_v44 = vsub.s32 32, %v1526_v23  ;;  %v1531_v62 = vsub.s32 4294967266, %v1526_v23  ;;  %v1411_v31 = vadd.s32 %v1410_v12, %v1406_v6  ;;  %v1652_v47 = vadd.s32 3, %v1648_v2 }
 0x204   : > { %v1254_v63 = vand.u32 8388607, %v1247_v59  ;;  %v1267_v14 = vshll.u32 %v5745_v20, %v5787_v38  ;;  %v1268_v25 = vshrl.u32 %v5746_v17, %v5788_v3  ;;  %v1528_v30 = vshll.u32 %v5297_v29, %v1526_v23 }
 0x205   : > { %v1529_v5 = vshrl.u32 %v1511_v32, %v1527_v44  ;;  %v1532_v24 = vadd.s32 127, %v1531_v62  ;;  %v1412_v10 = vadd.s32 536870912, %v1411_v31  ;;  %v1265_v15 = vshrl.u32 %v5745_v20, %v5788_v3 }
 0x206   : > { %v1269_v51 = vor.u32 %v1268_v25, %v1267_v14  ;;  %v1270_v13 = vshll.u32 %v5746_v17, %v5787_v38  ;;  %v1271_v45 = vshrl.u32 %v5740_v4, %v5788_v3  ;;  %v5379_v60 = vsel %vm2897_vm15, 0, %v5250_v39 }
 0x207   : > { %v1530_v52 = vor.u32 %v1529_v5, %v1528_v30  ;;  %v1533_v29 = vshll.u32 %v1532_v24, 23  ;;  %v5381_v21 = vshrl.u32 %v1412_v10, 30  ;;  %v1653_v55 = vand.u32 3, %v1652_v47 }
 0x208   : > { %vm1457_vm13 = vcmp.lt.s32.totalorder %v5766_v48, 0  ;;  %v1264_v20 = vshll.u32 %v5744_v27, %v5787_v38  ;;  %v1272_v43 = vor.u32 %v1271_v45, %v1270_v13  ;;  %vm1279_vm1 = vcmp.lt.s32.totalorder %v5785_v9, 1 }
 0x209   : > { %v1534_v17 = vor.u32 4788187, %v1533_v29  ;;  %v1414_v28 = vshll.u32 %v5381_v21, 30  ;;  %vm1281_vm14 = vcmp.lt.s32.totalorder %v5785_v9, 3  ;;  %vm1651_vm4 = vweird.f32 %v4449_v11 }
 0x20a   : > { %v1255_v4 = vor.u32 8388608, %v1254_v63  ;;  %v1266_v39 = vor.u32 %v1265_v15, %v1264_v20  ;;  %v1291_v61 = vsel %vm1279_vm1, %v1269_v51, %v1272_v43  ;;  %v1293_v19 = vsel %vm1281_vm14, %v5789_v16, %v1292_v1 }
 0x20b   : > { %vm5397_vm7 = vcmp.le.f32.partialorder %v1455_v54, 0.7853982  ;;  %v1535_v22 = vand.u32 2147483647, %v1534_v17  ;;  %v1537_v56 = vcvt.s32.f32 %v1530_v52  ;;  %v5401_v37 = vsub.s32 %v1411_v31, %v1414_v28  ;;  %v2385_v28 = vld [vmem:[%s5623_s7] sm:$0xff] }
 0x20c   : > { %vm1654_vm8 = vcmp.lt.s32.totalorder %v1653_v55, 2  ;;  %vm1655_vm9 = vcmp.eq.s32.totalorder %v1653_v55, 0  ;;  %vm1658_vm11 = vcmp.eq.s32.totalorder %v1653_v55, 2  ;;  %vm1280_vm10 = vcmp.lt.s32.totalorder %v5785_v9, 2 }
 0x20d   : > { %v3484_v36 = vpop.eup %3483  ;;  %v1538_v7 = vmul.f32 %v1537_v56, %v1535_v22  ;;  %v1541_v26 = vsub.s32 4, %v5281_v41  ;;  %v1417_v35 = vsub.s32 0, %v5401_v37  ;;  %v1294_v54 = vsel %vm1280_vm10, %v1291_v61, %v1293_v19  ;;  %v5793_v19 = vld [vmem:[#allocation13_spill] sm:$0xff] }
 0x20e   : > { %v3486_v8 = vpop.eup %3485  ;;  %v1659_v50 = vxor.u32 2147483648, %v3484_v36  ;;  %v1287_v53 = vsel %vm1279_vm1, %v1266_v39, %v1269_v51  ;;  %v1289_v34 = vsel %vm1281_vm14, %v1272_v43, %v5792_v18  ;;  %v1295_v1 = vshll.u32 %v1255_v4, 8 }
 0x20f   : > { %v1656_v57 = vxor.u32 2147483648, %v3486_v8  ;;  %v1539_v2 = vxor.u32 2147483648, %v1538_v7  ;;  %v2903_v6 = vmin.u32 %v1417_v35, %v5401_v37  ;;  %v1263_v23 = vshrl.u32 %v5744_v27, %v5788_v3 }
 0x210   : > { %v1660_v12 = vsel %vm1658_vm11, %v1659_v50, %v3486_v8  ;;  %v1284_v32 = vsel %vm1282_vm6, %v1272_v43, 2102212464  ;;  %v5419_v44 = vmul.u32.u64.low %v1295_v1, %v1294_v54  ;;  %v5420_v62 = vmul.u32.u64.high %v1295_v1, %v1294_v54, %v5419_v44  ;;  %v5795_v50 = vld [vmem:[#allocation9_spill] sm:$0xff] }
 0x211   : > { %v1657_v31 = vsel %vm1655_vm9, %v3484_v36, %v1656_v57  ;;  %v1540_v47 = vsel %vm1457_vm13, %v1539_v2, %v1538_v7  ;;  %v1419_v63 = vclz %v2903_v6  ;;  %v1290_v38 = vsel %vm1280_vm10, %v1287_v53, %v1289_v34  ;;  %v5796_v53 = vld [vmem:[#allocation10_spill] sm:$0xff]  ;;  %v5797_v57 = vld [vmem:[#allocation23_spill] sm:$0xff]  ;;  %v5798_v44 = vld [vmem:[#allocation17_spill] sm:$0xff] }
 0x212   : > { %v1661_v14 = vsel %vm1654_vm8, %v1657_v31, %v1660_v12  ;;  %v1542_v27 = vsel %vm1457_vm13, %v1541_v26, %v5281_v41  ;;  %v1543_v3 = vsel %vm5397_vm7, %v5766_v48, %v1540_v47  ;;  %v1283_v25 = vsel %vm1279_vm1, %v1263_v23, %v1266_v39 }
 0x213   : > { %v1662_v30 = vsel %vm1651_vm4, nan, %v1661_v14  ;;  %3487 = vcosq.f32 %v1543_v3  ;;  %v2904_v5 = vadd.s32 4294967294, %v1419_v63  ;;  %v1285_v24 = vsel %vm1281_vm14, %v1269_v51, %v1284_v32 }
 0x214   : > { %v1115_v10 = vsub.s32 4294967266, %v5357_v40  ;;  %3326 = vmatprep.subr.mxu0 %v1662_v30  ;;  %3489 = vsinq.f32 %v1543_v3  ;;  %v5441_v41 = vmul.u32.u64.low %v1295_v1, %v1290_v38  ;;  %v5442_v15 = vmul.u32.u64.high %v1295_v1, %v1290_v38, %v5441_v41 }
 0x215   : > { %3327 = vmatpush3.msra.mxu0 %v1662_v30  ;;  %vm2905_vm6 = vcmp.lt.s32.totalorder %v2904_v5, 0  ;;  %v1219_v13 = vsub.s32 4294967266, %v5379_v60  ;;  %v1544_v11 = vsel %vm5397_vm7, 0, %v1542_v27  ;;  %v1286_v52 = vsel %vm1280_vm10, %v1283_v25, %v1285_v24 }
 0x216   : > { %v1422_v45 = vsel %vm2905_vm6, 0, %v2904_v5  ;;  %v1407_v51 = vadd.s32 %v5323_v33, %v5312_v58  ;;  %vm1304_vm12 = vc.u32 %v5420_v62, %v5441_v41  ;;  %v1116_v20 = vadd.s32 127, %v1115_v10 }
 0x217   : > { %v1423_v29 = vsub.s32 32, %v1422_v45  ;;  %v1427_v55 = vsub.s32 4294967266, %v1422_v45  ;;  %v1215_v43 = vsub.s32 32, %v5379_v60  ;;  %v1305_v17 = vadd.s32 1, %v5442_v15 }
 0x218   : > { %v1424_v9 = vshll.u32 %v5401_v37, %v1422_v45  ;;  %v1302_v61 = vmul.u32 %v1295_v1, %v1286_v52  ;;  %v1220_v58 = vadd.s32 127, %v1219_v13  ;;  %v1548_v33 = vadd.s32 3, %v1544_v11 }
 0x219   : > { %v1425_v4 = vshrl.u32 %v1407_v51, %v1423_v29  ;;  %v1428_v39 = vadd.s32 127, %v1427_v55  ;;  %v1306_v16 = vsel %vm1304_vm12, %v1305_v17, %v5442_v15  ;;  %vm2389_vm5 = vcmask 687104  }
 0x21a   : > { %v1199_v22 = vadd.s32 %v5794_v49, %v5793_v19  ;;  %v1307_v7 = vadd.s32 %v1306_v16, %v1302_v61  ;;  %3338 = vmatprep.mubr.msk.f32.mxu0 %vm2389_vm5, %v2385_v28  ;;  %v1111_v26 = vsub.s32 32, %v5357_v40  ;;  %v1117_v35 = vshll.u32 %v1116_v20, 23 }
 0x21b   : > { %v1426_v56 = vor.u32 %v1425_v4, %v1424_v9  ;;  %v1429_v36 = vshll.u32 %v1428_v39, 23  ;;  %v1095_v18 = vadd.s32 %v5796_v53, %v5795_v50  ;;  %v1221_v34 = vshll.u32 %v1220_v58, 23 }
 0x21c   : > { %v1217_v37 = vshrl.u32 %v1199_v22, %v1215_v43  ;;  %v1308_v8 = vadd.s32 536870912, %v1307_v7  ;;  %v1549_v1 = vand.u32 3, %v1548_v33  ;;  %v1216_v2 = vshll.u32 %v5797_v57, %v5379_v60 }
 0x21d   : > { %v1430_v54 = vor.u32 4788187, %v1429_v36  ;;  %v1433_v23 = vcvt.s32.f32 %v1426_v56  ;;  %v1112_v31 = vshll.u32 %v5798_v44, %v5357_v40  ;;  %v1113_v47 = vshrl.u32 %v1095_v18, %v1111_v26  ;;  %v5802_v18 = vld [vmem:[#allocation6_spill] sm:$0xff] }
 0x21e   : > { %v5469_v12 = vshrl.u32 %v1308_v8, 30  ;;  %v1118_v63 = vor.u32 4788187, %v1117_v35  ;;  %v1218_v14 = vor.u32 %v1217_v37, %v1216_v2  ;;  %v1222_v30 = vor.u32 4788187, %v1221_v34  ;;  %v5801_v35 = vld [vmem:[#allocation7_spill] sm:$0xff] }
 0x21f   : > { %v1431_v6 = vand.u32 2147483647, %v1430_v54  ;;  %vm1547_vm3 = vweird.f32 %v5766_v48  ;;  %vm1554_vm2 = vcmp.eq.s32.totalorder %v1549_v1, 2  ;;  %vm1551_vm15 = vcmp.eq.s32.totalorder %v1549_v1, 0 }
 0x220   : > { %v3488_v32 = vpop.eup %3487  ;;  %v1310_v25 = vshll.u32 %v5469_v12, 30  ;;  %vm1550_vm13 = vcmp.lt.s32.totalorder %v1549_v1, 2  ;;  %vm1353_vm1 = vcmp.lt.s32.totalorder %v5772_v42, 0  ;;  %v1437_v40 = vsub.s32 4, %v5381_v21 }
 0x221   : > { %v3490_v38 = vpop.eup %3489  ;;  %v1555_v27 = vxor.u32 2147483648, %v3488_v32  ;;  %v1434_v3 = vmul.f32 %v1433_v23, %v1431_v6  ;;  %vm5479_vm14 = vcmp.le.f32.partialorder %v1351_v46, 0.7853982  ;;  %v1114_v29 = vor.u32 %v1113_v47, %v1112_v31 }
 0x222   : > { %v1552_v60 = vxor.u32 2147483648, %v3490_v38  ;;  %v1311_v10 = vsub.s32 %v1307_v7, %v1310_v25  ;;  %v1223_v55 = vand.u32 2147483647, %v1222_v30  ;;  %v1438_v43 = vsel %vm1353_vm1, %v1437_v40, %v5381_v21 }
 0x223   : > { %v1556_v5 = vsel %vm1554_vm2, %v1555_v27, %v3490_v38  ;;  %v1435_v24 = vxor.u32 2147483648, %v1434_v3  ;;  %v1119_v46 = vand.u32 2147483647, %v1118_v63  ;;  %v1225_v17 = vcvt.s32.f32 %v1218_v14 }
 0x224   : > { %v1553_v15 = vsel %vm1551_vm15, %v3488_v32, %v1552_v60  ;;  %v1313_v45 = vsub.s32 0, %v1311_v10  ;;  %v1121_v9 = vcvt.s32.f32 %v1114_v29  ;;  %v1440_v39 = vsel %vm5479_vm14, 0, %v1438_v43  ;;  %v5809_v60 = vld [vmem:[#allocation18_spill] sm:$0xff] }
 0x225   : > { %v1557_v13 = vsel %vm1550_vm13, %v1553_v15, %v1556_v5  ;;  %v1436_v48 = vsel %vm1353_vm1, %v1435_v24, %v1434_v3  ;;  %v1226_v4 = vmul.f32 %v1225_v17, %v1223_v55  ;;  %v1444_v33 = vadd.s32 3, %v1440_v39 }
 0x226   : > { %v1558_v52 = vsel %vm1547_vm3, nan, %v1557_v13  ;;  %v1439_v51 = vsel %vm5479_vm14, %v5772_v42, %v1436_v48  ;;  %v2899_v20 = vmin.u32 %v1313_v45, %v1311_v10  ;;  %v1122_v58 = vmul.f32 %v1121_v9, %v1119_v46 }
 0x227   : > { %3328 = vmatprep.subr.mxu0 %v1558_v52  ;;  %3491 = vcosq.f32 %v1439_v51  ;;  %v1227_v19 = vxor.u32 2147483648, %v1226_v4  ;;  %v1303_v49 = vadd.s32 %v5441_v41, %v5420_v62  ;;  %vm1145_vm7 = vcmp.lt.s32.totalorder %v5801_v35, 0 }
 0x228   : > { %3329 = vmatpush3.msra.mxu0 %v1558_v52  ;;  %3493 = vsinq.f32 %v1439_v51  ;;  %v1315_v28 = vclz %v2899_v20  ;;  %v1123_v56 = vxor.u32 2147483648, %v1122_v58  ;;  %v1445_v37 = vand.u32 3, %v1444_v33 }
 0x229   : > { %v1228_v54 = vsel %vm1145_vm7, %v1227_v19, %v1226_v4  ;;  %vm1041_vm8 = vcmp.lt.s32.totalorder %v5802_v18, 0  ;;  %v5803_v57 = vand.u32 2147483647, %v5801_v35  ;;  %v5806_v47 = vand.u32 2147483647, %v5802_v18 }
 0x22a   : > { %v2900_v61 = vadd.s32 4294967294, %v1315_v28  ;;  %v1124_v62 = vsel %vm1041_vm8, %v1123_v56, %v1122_v58  ;;  %vm1447_vm11 = vcmp.eq.s32.totalorder %v1445_v37, 0  ;;  %vm1450_vm10 = vcmp.eq.s32.totalorder %v1445_v37, 2 }
 0x22b   : > { %vm5499_vm9 = vcmp.le.f32.partialorder %v5803_v57, 0.7853982  ;;  %vm5508_vm6 = vcmp.le.f32.partialorder %v5806_v47, 0.7853982  ;;  %vm1446_vm12 = vcmp.lt.s32.totalorder %v1445_v37, 2  ;;  %vm1443_vm3 = vweird.f32 %v5772_v42 }
 0x22c   : > { %vm2901_vm4 = vcmp.lt.s32.totalorder %v2900_v61, 0  ;;  %v1231_v23 = vsel %vm5499_vm9, %v5801_v35, %v1228_v54  ;;  %v1127_v14 = vsel %vm5508_vm6, %v5802_v18, %v1124_v62  ;;  %v1229_v5 = vsub.s32 4, %v5809_v60  ;;  %v2387_v62 = vld [vmem:[%s5623_s7 + $0x10] sm:$0xff] }
 0x22d   : > { %v1318_v16 = vsel %vm2901_vm4, 0, %v2900_v61  ;;  %3495 = vcosq.f32 %v1231_v23  ;;  %vm1249_vm2 = vcmp.lt.s32.totalorder %v5786_v0, 0  ;;  %v1333_v24 = vsub.s32 4, %v5469_v12 }
 0x22e   : > { %v1319_v22 = vsub.s32 32, %v1318_v16  ;;  %v1323_v21 = vsub.s32 4294967266, %v1318_v16  ;;  %v1320_v36 = vshll.u32 %v1311_v10, %v1318_v16  ;;  %3497 = vsinq.f32 %v1231_v23  ;;  %v5810_v10 = vld [vmem:[#allocation15_spill] sm:$0xff] }
 0x22f   : > { %3499 = vcosq.f32 %v1127_v14  ;;  %vm1248_vm15 = vcmp.le.f32.partialorder %v1247_v59, 0.7853982  ;;  %v1125_v15 = vsub.s32 4, %v5810_v10  ;;  %v1230_v13 = vsel %vm1145_vm7, %v1229_v5, %v5809_v60 }
 0x230   : > { %v1321_v7 = vshrl.u32 %v1303_v49, %v1319_v22  ;;  %v1324_v26 = vadd.s32 127, %v1323_v21  ;;  %3501 = vsinq.f32 %v1127_v14  ;;  %v1334_v11 = vsel %vm1249_vm2, %v1333_v24, %v5469_v12 }
 0x231   : > { %v1126_v48 = vsel %vm1041_vm8, %v1125_v15, %v5810_v10  ;;  %v1232_v59 = vsel %vm5499_vm9, 0, %v1230_v13  ;;  %v1336_v45 = vsel %vm1248_vm15, 0, %v1334_v11 }
 0x232   : > { %v1322_v8 = vor.u32 %v1321_v7, %v1320_v36  ;;  %v1325_v50 = vshll.u32 %v1324_v26, 23  ;;  %v1128_v52 = vsel %vm5508_vm6, 0, %v1126_v48  ;;  %v1236_v51 = vadd.s32 3, %v1232_v59 }
 0x233   : > { %v1340_v55 = vadd.s32 3, %v1336_v45  ;;  %v1132_v43 = vadd.s32 3, %v1128_v52 }
 0x234   : > { %v3492_v53 = vpop.eup %3491  ;;  %v1326_v1 = vor.u32 4788187, %v1325_v50  ;;  %v1329_v31 = vcvt.s32.f32 %v1322_v8  ;;  %v1237_v12 = vand.u32 3, %v1236_v51 }
 0x235   : > { %v3494_v34 = vpop.eup %3493  ;;  %v1451_v41 = vxor.u32 2147483648, %v3492_v53  ;;  %v1341_v28 = vand.u32 3, %v1340_v55  ;;  %v1133_v39 = vand.u32 3, %v1132_v43  ;;  %v2528_v55 = vld [vmem:[%s5625_s9 + $0x8] sm:$0xff]  ;;  %v5811_v43 = vmov 0.0  }
 0x236   : > { %v1448_v6 = vxor.u32 2147483648, %v3494_v34  ;;  %v1327_v44 = vand.u32 2147483647, %v1326_v1  ;;  %vm1238_vm13 = vcmp.lt.s32.totalorder %v1237_v12, 2  ;;  %vm1239_vm1 = vcmp.eq.s32.totalorder %v1237_v12, 0  ;;  %v3312_v1 = vpop.f32.mrf.mxu1 }
 0x237   : > { %v1452_v32 = vsel %vm1450_vm10, %v1451_v41, %v3494_v34  ;;  %vm1242_vm14 = vcmp.eq.s32.totalorder %v1237_v12, 2  ;;  %vm1346_vm4 = vcmp.eq.s32.totalorder %v1341_v28, 2  ;;  %vm1343_vm7 = vcmp.eq.s32.totalorder %v1341_v28, 0  ;;  %v3274_v41 = vpop.f32.mrf.mxu0 }
 0x238   : > { %v1449_v38 = vsel %vm1447_vm11, %v3492_v53, %v1448_v6  ;;  %v1330_v3 = vmul.f32 %v1329_v31, %v1327_v44  ;;  %vm1135_vm8 = vcmp.eq.s32.totalorder %v1133_v39, 0  ;;  %vm1138_vm9 = vcmp.eq.s32.totalorder %v1133_v39, 2  ;;  %v2366_v6 = vpop.f32.mrf.mxu1  ;;  %v2517_v31 = vpop.permute.xlu1 %2516 }
 0x239   : > { %v1453_v27 = vsel %vm1446_vm12, %v1449_v38, %v1452_v32  ;;  %vm1342_vm11 = vcmp.lt.s32.totalorder %v1341_v28, 2  ;;  %vm1339_vm10 = vweird.f32 %v5786_v0  ;;  %vm1134_vm6 = vcmp.lt.s32.totalorder %v1133_v39, 2  ;;  %v2269_v57 = vpop.f32.mrf.mxu0 }
 0x23a   : > { %v1454_v25 = vsel %vm1443_vm3, nan, %v1453_v27  ;;  %v1331_v30 = vxor.u32 2147483648, %v1330_v3  ;;  %v3496_v29 = vpop.eup %3495  ;;  %vm1235_vm12 = vweird.f32 %v5801_v35  ;;  %vm1131_vm3 = vweird.f32 %v5802_v18  ;;  %v2388_v35 = vld [vmem:[%s5623_s7 + $0x18] sm:$0xff]  ;;  %v2527_v18 = vld [vmem:[%s5625_s9] sm:$0xff]  ;;  %v2512_v27 = vpop.permute.xlu0 %2511 }
 0x23b   : > { %3330 = vmatprep.subr.mxu0 %v1454_v25  ;;  %v3498_v20 = vpop.eup %3497  ;;  %v1243_v4 = vxor.u32 2147483648, %v3496_v29  ;;  %v2372_v38 = vadd.f32 %v3312_v1, %v3274_v41 }
 0x23c   : > { %3331 = vmatpush3.msra.mxu0 %v1454_v25  ;;  %v1332_v42 = vsel %vm1249_vm2, %v1331_v30, %v1330_v3  ;;  %v3500_v46 = vpop.eup %3499  ;;  %v1240_v9 = vxor.u32 2147483648, %v3498_v20  ;;  %vm2555_vm2 = vcmask 261120   ;;  %v2367_v25 = vadd.f32 %v2366_v6, %v2269_v57 }
 0x23d   : > { %v1335_v40 = vsel %vm1248_vm15, %v5786_v0, %v1332_v42  ;;  %v3502_v17 = vpop.eup %3501  ;;  %v1139_v33 = vxor.u32 2147483648, %v3500_v46  ;;  %v1244_v21 = vsel %vm1242_vm14, %v1243_v4, %v3498_v20  ;;  %v2386_v0 = vld [vmem:[%s5623_s7 + $0x8] sm:$0xff]  ;;  %3352 = vmatprep.mubr.msk.f32.mxu1 %vm2555_vm2, %v2527_v18  ;;  %v2529_v20 = vld [vmem:[%s5625_s9 + $0x10] sm:$0xff] }
 0x23e   : > { %3503 = vcosq.f32 %v1335_v40  ;;  %v1136_v58 = vxor.u32 2147483648, %v3502_v17  ;;  %v1241_v22 = vsel %vm1239_vm1, %v3496_v29, %v1240_v9  ;;  %v2502_v59 = vpop.permute.xlu0 %2501 }
 0x23f   : > { %3505 = vsinq.f32 %v1335_v40  ;;  %v1140_v26 = vsel %vm1138_vm9, %v1139_v33, %v3502_v17  ;;  %v1245_v54 = vsel %vm1238_vm13, %v1241_v22, %v1244_v21  ;;  %v2507_v40 = vpop.permute.xlu1 %2506 }
 0x240   : > { %v1137_v7 = vsel %vm1135_vm8, %v3500_v46, %v1136_v58  ;;  %v1246_v53 = vsel %vm1235_vm12, nan, %v1245_v54  ;;  %v2530_v46 = vld [vmem:[%s5625_s9 + $0x18] sm:$0xff] }
 0x241   : > { %v1141_v50 = vsel %vm1134_vm6, %v1137_v7, %v1140_v26  ;;  %v2657_v7 = vld [vmem:[%s5627_s11] sm:$0x1]  ;;  %v2664_v26 = vlaneseq }
 0x242   : > { %v1142_v34 = vsel %vm1131_vm3, nan, %v1141_v50  ;;  %v2548_v28 = vpop.permute.xlu0 %2547 }
 0x243   : > { %v2553_v17 = vpop.permute.xlu1 %2552 }
 0x24b   : > { %v3504_v61 = vpop.eup %3503 }
 0x24c   : > { %v3506_v16 = vpop.eup %3505  ;;  %v1347_v19 = vxor.u32 2147483648, %v3504_v61 }
 0x24d   : > { %v1344_v49 = vxor.u32 2147483648, %v3506_v16 }
 0x24e   : > { %v1348_v56 = vsel %vm1346_vm4, %v1347_v19, %v3506_v16 }
 0x24f   : > { %v1345_v36 = vsel %vm1343_vm7, %v3504_v61, %v1344_v49  ;;  %v2543_v61 = vpop.permute.xlu1 %2542  ;;  %v2538_v49 = vpop.permute.xlu0 %2537 }
 0x250   : > { %v1349_v37 = vsel %vm1342_vm11, %v1345_v36, %v1348_v56 }
 0x251   : > { %v1350_v8 = vsel %vm1339_vm10, nan, %v1349_v37  ;;  %v2665_v37 = vshrl.u32 %v2664_v26, 7 }
 0x252   : > { %3332 = vmatprep.subr.mxu0 %v1350_v8 }
 0x253   : > { %3333 = vmatpush3.msra.mxu0 %v1350_v8  ;;  %v2666_v54 = vsub.s32 0, %v2665_v37  ;;  %v2662_v8 = vpop.permute.xlu1 %2661 }
 0x254   : > { %3334 = vmatprep.subr.mxu0 %v1246_v53 }
 0x255   : > { %3335 = vmatpush3.msra.mxu0 %v1246_v53  ;;  %v2667_v50 = vrot.slane %v2662_v8, %v2666_v54 }
 0x256   : > { %3336 = vmatprep.subr.mxu0 %v1142_v34 }
 0x257   : > { %3337 = vmatpush3.msra.mxu0 %v1142_v34 }
 0x258   : > { %3339 = vmatmul.mubr.msk.f32.vlgmr.msra.gmra.mxu0 %vm2389_vm5, %v2386_v0 }
 0x259   : > { %3341 = vmatprep.mubr.msk.f32.mxu0 %vm2389_vm5, %v2387_v62 }
 0x25c   : > { %3342 = vmatmul.mubr.msk.f32.gmra.mxu0 %vm2389_vm5, %v2388_v35 }
 0x271   : > { %v3315_v23 = vpop.f32.mrf.mxu1 }
 0x273   : > { %v2376_v47 = vpop.f32.mrf.mxu1 }
 0x275   : > { %v3277_v2 = vpop.f32.mrf.mxu0 }
 0x276   : > { %v2382_v14 = vadd.f32 %v3315_v23, %v3277_v2 }
 0x277   : > { %v2279_v32 = vpop.f32.mrf.mxu0 }
 0x278   : > { %v2377_v30 = vadd.f32 %v2376_v47, %v2279_v32 }
 0x318   : > { %v3340_v44 = vpop.f32.mrf.mxu0 }
 0x319   : > { %v2492_v60 = vadd.f32 %v3340_v44, %v2372_v38 }
 0x31a   : > { %v2472_v63 = vpop.f32.mrf.mxu0 }
 0x31b   : > { %v2491_v42 = vadd.f32 %v2472_v63, %v2367_v25  ;;  %v2520_v13 = vadd.f32 %v2507_v40, %v2492_v60 }
 0x31c   : > { %v3343_v3 = vpop.f32.mrf.mxu0 }
 0x31d   : > { %v2494_v5 = vadd.f32 %v3343_v3, %v2382_v14  ;;  %v2519_v45 = vadd.f32 %v2502_v59, %v2491_v42  ;;  %v2524_v51 = vmax.f32 %v2520_v13, 0.0 }
 0x31e   : > { %v2482_v24 = vpop.f32.mrf.mxu0 }
 0x31f   : > { %v2522_v10 = vadd.f32 %v2517_v31, %v2494_v5  ;;  %v2493_v15 = vadd.f32 %v2482_v24, %v2377_v30  ;;  %v2523_v29 = vmax.f32 %v2519_v45, 0.0 }
 0x321   : > { %v2526_v11 = vmax.f32 %v2522_v10, 0.0  ;;  %v2521_v48 = vadd.f32 %v2512_v27, %v2493_v15 }
 0x323   : > { %v2525_v52 = vmax.f32 %v2521_v48, 0.0  ;;  %3344 = vmatprep.subr.mxu1 %v2526_v11 }
 0x324   : > { %3345 = vmatpush3.msra.mxu1 %v2526_v11 }
 0x325   : > { %3346 = vmatprep.subr.mxu1 %v2525_v52 }
 0x326   : > { %3347 = vmatpush3.msra.mxu1 %v2525_v52 }
 0x327   : > { %3348 = vmatprep.subr.mxu1 %v2524_v51 }
 0x328   : > { %3349 = vmatpush3.msra.mxu1 %v2524_v51 }
 0x329   : > { %3350 = vmatprep.subr.mxu1 %v2523_v29 }
 0x32a   : > { %3351 = vmatpush3.msra.mxu1 %v2523_v29 }
 0x32b   : > { %3353 = vmatmul.mubr.msk.f32.vlgmr.msra.gmra.mxu1 %vm2555_vm2, %v2528_v55  ;;  %3358 = vmatprep.subr.mxu1 %v5811_v43 }
 0x32c   : > { %3355 = vmatprep.mubr.msk.f32.mxu1 %vm2555_vm2, %v2529_v20 }
 0x32f   : > { %3356 = vmatmul.mubr.msk.f32.gmra.mxu1 %vm2555_vm2, %v2530_v46 }
 0x330   : > { %3366 = vmatprep.mubr.msk.f32.mxu1 %vm3574_vm0, %v5811_v43 }
 0x3eb   : > { %v3354_v12 = vpop.f32.mrf.mxu1 }
 0x3ec   : > { %v2640_v33 = vadd.f32 %v3354_v12, %v2543_v61 }
 0x3ed   : > { %v2634_v9 = vpop.f32.mrf.mxu1 }
 0x3ee   : > { %v2635_v22 = vadd.f32 %v2634_v9, %v2538_v49  ;;  %v2654_v56 = vmax.f32 %v2640_v33, 0.0 }
 0x3ef   : > { %v3357_v4 = vpop.f32.mrf.mxu1 }
 0x3f0   : > { %v2650_v39 = vadd.f32 %v3357_v4, %v2553_v17  ;;  %v2653_v36 = vmax.f32 %v2635_v22, 0.0 }
 0x3f1   : > { %v2644_v58 = vpop.f32.mrf.mxu1 }
 0x3f2   : > { %v2656_v16 = vmax.f32 %v2650_v39, 0.0  ;;  %v2645_v19 = vadd.f32 %v2644_v58, %v2548_v28 }
 0x3f4   : > { %v2655_v21 = vmax.f32 %v2645_v19, 0.0  ;;  %3359 = vmatpush3.msra.mxu1 %v2656_v16 }
 0x3f5   : > { %3360 = vmatprep.subr.mxu1 %v5811_v43 }
 0x3f6   : > { %3361 = vmatpush3.msra.mxu1 %v2655_v21 }
 0x3f7   : > { %3362 = vmatprep.subr.mxu1 %v5811_v43 }
 0x3f8   : > { %3363 = vmatpush3.msra.mxu1 %v2654_v56 }
 0x3f9   : > { %3364 = vmatprep.subr.mxu1 %v5811_v43 }
 0x3fa   : > { %3365 = vmatpush3.msra.mxu1 %v2653_v36 }
 0x3fb   : > { %3367 = vmatmul.mubr.msk.f32.vlgmr.msra.gmra.mxu1 %vm2555_vm2, %v2657_v7 }
 0x4bb   : > { %v2737_v53 = vpop.f32.mrf.mxu1 }
 0x4bc   : > { %v2738_v34 = vadd.f32 %v2737_v53, %v2667_v50 }
 0x4bd   : > { %v3368_v0 = vpop.f32.mrf.mxu1 }
 0x4be   : > { %v2984_v62 = vmul.f32 -1.442695, %v2738_v34 }
 0x4c0   : > { %3507 = vpow2.f32 %v2984_v62 }
 0x4cd   : > { %v3508_v35 = vpop.eup %3507 }
 0x4ce   : > { %v2744_v18 = vadd.f32 1.0, %v3508_v35 }
 0x4d0   : > { %3509 = vrcp.f32 %v2744_v18 }
 0x4dd   : > { %v3510_v41 = vpop.eup %3509 }
 0x4de   : > { %2747 = vst [vmem:[%s475_s22] sm:$0x1] %v3510_v41 }
 0x4df   : > { %3524 = shalt.err (!%p3521_p3)
}
 0x4e0   : > { %s3525_s21 = scalar_lea.hbm %s5581_s12, 16  ;;  %s3529_s24 = scalar_lea.hbm %s5629_s13, 32 }
 0x4e1   : > { %p3526_p4 = scmp.ne.s32.totalorder %s5581_s12, %s3525_s21  ;;  %p3530_p9 = scmp.lt.s32.totalorder %s5581_s12, %s5629_s13 }
 0x4e2   : > { %p3531_p10 = scmp.lt.s32.totalorder %s3529_s24, %s3525_s21 }
 0x4e3   : > { %p3527_p7 = pnand %p3526_p4, %p3691_p5 }
 0x4e4   : > { %p3532_p11 = por %p3531_p10, %p3530_p9 }
 0x4e5   : > { %p3528_p8 = pneg %p3527_p7 }
 0x4e7   : > { %p3533_p12 = pnand %p3532_p11, %p3528_p8 }
 0x4e9   : > { %3536 = shalt.err (!%p3533_p12)
}
 0x4ea   : > { %3413 = dma.vmem_to_hbm [thread:$0]  (%p3691_p5), %s2762_s23, 16, %s5581_s12, %s2749_s14  }
 0x4eb PF: > { %p3419_p13 = scmp.ge.s32.totalorder %s3571_s30, 2  ;;  %s2773_s0 = sand.u32 1, %s3559_s27  }
 0x4ec   : > { %s2774_s1 = scalar_lea.sflag [#allocation4], %s2773_s0 }
 0x4ed   : > { %p3416_p0 = pnand %p3419_p13, %p3695_p6 }
 0x4ef   : > { %p3417_p1 = pneg %p3416_p0 }
 0x4f1   : > { %3554 = dma.done.wait (%p3417_p1), %s2774_s1, 16  }
 0x4f2   : > { %3556 = vsyncadd (%p3417_p1), %s2774_s1, 4294967280  ;;  %p25_p2 = scmp.ge.s32.totalorder %s3679_s15, 4   ;;  %s5812_s27 = smov %s3563_s28 }
 0x4f3   : > { %s5813_s28 = smov %s3567_s29  ;;  %s5814_s29 = smov %s3689_s18 }
 0x4f4   : > { %s5815_s30 = smov %s3679_s15  ;;  %27 = sbr.rel (!%p25_p2) target bundleno = 6 (0x6), region = 110 }
 0x4f9   :  { %2778 = vsyncpa [#allocation4], 1 }
 0x4fa   :  { %2780 = vsyncpa [#allocation4 + $0x1], 1 }

</bundles_post_ra>
